<compile_context>
chip_gen: v7x
topology: tpu7x:2x2x1
jax: 0.10.0
libtpu: 0.0.40
codegen_flags: <defaults>
</compile_context>

<pallas_src>
import numpy as np
import jax
import jax.numpy as jnp
from jax import lax
from jax.experimental import pallas as pl
from jax.experimental.pallas import tpu as pltpu


def _pick_tile(total, target, align=128):
    """Largest divisor of `total` that is a multiple of `align` and <= target."""
    if total % align != 0 or total <= align:
        return total
    t = min(total, max(align, (min(target, total) // align) * align))
    while total % t != 0:
        t -= align
    return t


# ----------------------------------------------------------------------------
# Kernel 1: 3x3 conv (stride 1, pad 1) + ReLU — synthetic RCNN_base
#   im2col inside the kernel: one (TH*W, 9*Cin) x (9*Cin, Cout) MXU dot per tile.
#   Grid: (N, H // TH) — row tiles with a 2-row halo built in the wrapper.
# ----------------------------------------------------------------------------
def _conv3x3_relu_kernel(x_ref, w_ref, b_ref, o_ref):
    # x_ref: (TH+2, W+2, Cin)   w_ref: (9*Cin, Cout)   b_ref: (1, Cout)
    # o_ref: (TH, W, Cout)
    TH, W, Cout = o_ref.shape
    Cin = x_ref.shape[2]
    cols = []
    for kh in range(3):
        rows = x_ref[kh:kh + TH, :, :]                 # whole rows (sublane-contig)
        for kw in range(3):
            cols.append(rows[:, kw:kw + W, :].reshape(TH * W, Cin))
    patch = jnp.concatenate(cols, axis=1)              # (TH*W, 9*Cin)
    y = jnp.dot(patch, w_ref[...], preferred_element_type=jnp.float32)
    y = y + b_ref[...]
    o_ref[...] = jnp.maximum(y, 0.0).reshape(TH, W, Cout)


def conv3x3_relu(x_nhwc, w, b, tile_h=8):
    N, H, W, Cin = x_nhwc.shape
    Cout = w.shape[-1]
    TH = min(tile_h, H)
    while H % TH != 0:
        TH -= 1
    n_th = H // TH

    x_pad = jnp.pad(x_nhwc, ((0, 0), (1, 1), (1, 1), (0, 0)))
    # Overlapping row tiles (+halo) built once in the wrapper (cheap, plain XLA).
    tiles = jnp.stack([x_pad[:, h * TH:h * TH + TH + 2, :, :] for h in range(n_th)],
                      axis=1)                          # (N, n_th, TH+2, W+2, Cin)
    w2 = w.reshape(9 * Cin, Cout)                      # (kh, kw, cin) flattened

    return pl.pallas_call(
        _conv3x3_relu_kernel,
        out_shape=jax.ShapeDtypeStruct((N, H, W, Cout), jnp.float32),
        grid=(N, n_th),
        in_specs=[
            pl.BlockSpec((None, None, TH + 2, W + 2, Cin),
                         lambda n, h: (n, h, 0, 0, 0)),
            pl.BlockSpec((9 * Cin, Cout), lambda n, h: (0, 0)),
            pl.BlockSpec((1, Cout), lambda n, h: (0, 0)),
        ],
        out_specs=pl.BlockSpec((None, TH, W, Cout), lambda n, h: (n, h, 0, 0)),
        compiler_params=pltpu.CompilerParams(
            dimension_semantics=("parallel", "parallel")),
    )(tiles, w2, b.reshape(1, Cout))


# ----------------------------------------------------------------------------
# Kernel 2: ROI Align (pooled PxP, one bilinear sample per bin center)
#   One grid step per IMAGE; all R ROIs are processed together (masked by
#   image index), so the feature map is DMA'd once per image and the MXU sees
#   M = R*P instead of 7.  Output block is resident across the grid and
#   accumulated (P3 pattern).
# ----------------------------------------------------------------------------
def _roi_align_kernel(boxes_ref, imidx_ref, feat_ref, out_ref):
    # boxes_ref: (R, 4) f32   imidx_ref: (R, 1) i32   feat_ref: (Hf, Wf, C)
    # out_ref:   (R, P, P, C)
    n = pl.program_id(0)
    R = boxes_ref.shape[0]
    Hf, Wf, C = feat_ref.shape
    P = out_ref.shape[1]

    @pl.when(n == 0)
    def _():
        out_ref[...] = jnp.zeros_like(out_ref)

    x1 = boxes_ref[:, 0:1]
    y1 = boxes_ref[:, 1:2]
    x2 = boxes_ref[:, 2:3]
    y2 = boxes_ref[:, 3:4]                                        # (R, 1)
    bin_w = jnp.maximum(x2 - x1, 1.0) / P
    bin_h = jnp.maximum(y2 - y1, 1.0) / P
    same = (imidx_ref[...] == n).astype(jnp.float32)              # (R, 1)

    pc = lax.broadcasted_iota(jnp.float32, (1, P), 1) + 0.5       # bin centers
    yc = jnp.clip(y1 + pc * bin_h, 0.0, float(Hf - 1))            # (R, P)
    xc = jnp.clip(x1 + pc * bin_w, 0.0, float(Wf - 1))            # (R, P)

    ygrid = lax.broadcasted_iota(jnp.float32, (1, 1, Hf), 2)
    xgrid = lax.broadcasted_iota(jnp.float32, (1, 1, Wf), 2)
    wy = jnp.maximum(1.0 - jnp.abs(ygrid - yc[:, :, None]), 0.0)  # (R, P, Hf)
    wy = wy * same[:, :, None]                                    # mask wrong image
    wx = jnp.maximum(1.0 - jnp.abs(xgrid - xc[:, :, None]), 0.0)  # (R, P, Wf)

    # contraction 1 over y:  (R*P, Hf) x (Hf, Wf*C)   (C is a multiple of 128)
    feat2 = feat_ref[...].reshape(Hf, Wf * C)
    t = jnp.dot(wy.reshape(R * P, Hf), feat2,
                preferred_element_type=jnp.float32)               # (R*P, Wf*C)
    t3 = t.reshape(R * P, Wf, C)

    # contraction 2 over x: batched matmul (batch = R*P, M = P, K = Wf, N = C)
    wx_b = jnp.broadcast_to(wx[:, None, :, :], (R, P, P, Wf)).reshape(R * P, P, Wf)
    res = jnp.einsum('bqx,bxc->bqc', wx_b, t3,
                     preferred_element_type=jnp.float32)          # (R*P, P, C)
    out_ref[...] += res.reshape(R, P, P, C)


def roi_align(base_feat, boxes5, pooled=7, spatial_scale=1.0):
    # boxes5: (R, 5) columns (image_index, x1, y1, x2, y2) in feature coords.
    R = boxes5.shape[0]
    N, Hf, Wf, C = base_feat.shape
    img_idx = boxes5[:, 0:1].astype(jnp.int32)                    # (R, 1)
    coords = (boxes5[:, 1:5] * spatial_scale).astype(jnp.float32)  # (R, 4)
    return pl.pallas_call(
        _roi_align_kernel,
        out_shape=jax.ShapeDtypeStruct((R, pooled, pooled, C), jnp.float32),
        grid=(N,),
        in_specs=[
            pl.BlockSpec((R, 4), lambda n: (0, 0)),
            pl.BlockSpec((R, 1), lambda n: (0, 0)),
            pl.BlockSpec((None, Hf, Wf, C), lambda n: (n, 0, 0, 0)),
        ],
        out_specs=pl.BlockSpec((R, pooled, pooled, C), lambda n: (0, 0, 0, 0)),
        compiler_params=pltpu.CompilerParams(
            dimension_semantics=("arbitrary",)),   # output accumulates across images
    )(coords, img_idx, base_feat)


# ----------------------------------------------------------------------------
# Kernel 3: linear + ReLU — synthetic _head_to_tail (flatten + FC)
#   Tiled over (Nout, K) with an f32 VMEM accumulator; init/finalize via pl.when.
# ----------------------------------------------------------------------------
def _linear_relu_kernel(x_ref, w_ref, b_ref, o_ref, acc_ref):
    k = pl.program_id(1)

    @pl.when(k == 0)
    def _():
        acc_ref[...] = jnp.zeros_like(acc_ref)

    acc_ref[...] += jnp.dot(x_ref[...], w_ref[...],
                            preferred_element_type=jnp.float32)

    @pl.when(k == pl.num_programs(1) - 1)
    def _():
        o_ref[...] = jnp.maximum(acc_ref[...] + b_ref[...], 0.0)


def linear_relu(x, w, b, tn_target=128, tk_target=2048):
    M, K = x.shape
    Nout = w.shape[1]
    tn = _pick_tile(Nout, tn_target, 128)
    tk = _pick_tile(K, tk_target, 128)
    return pl.pallas_call(
        _linear_relu_kernel,
        out_shape=jax.ShapeDtypeStruct((M, Nout), jnp.float32),
        grid=(Nout // tn, K // tk),
        in_specs=[
            pl.BlockSpec((M, tk), lambda j, k: (0, k)),
            pl.BlockSpec((tk, tn), lambda j, k: (k, j)),
            pl.BlockSpec((1, tn), lambda j, k: (0, j)),
        ],
        out_specs=pl.BlockSpec((M, tn), lambda j, k: (0, j)),
        scratch_shapes=[pltpu.VMEM((M, tn), jnp.float32)],
        compiler_params=pltpu.CompilerParams(
            dimension_semantics=("parallel", "arbitrary")),
    )(x, w, b.reshape(1, Nout))


# ----------------------------------------------------------------------------
# Kernel 4: spatial masks — draw_union_boxes(pair_rois, 27) - 0.5 (binary)
#   All pairs in one call, pairs on the LANE axis (padded to 128) -> full-width
#   stores; transposed back to (Pn, 2, S, S) in the wrapper.
# ----------------------------------------------------------------------------
def _spatial_mask_kernel(rois_ref, o_ref):
    # rois_ref: (8, Pnp) f32 rows = (x1a,y1a,x2a,y2a, x1b,y1b,x2b,y2b)
    # o_ref:    (2, S, S, Pnp)
    S = o_ref.shape[1]
    Pnp = o_ref.shape[3]

    def row(i):
        return rois_ref[i:i + 1, :].reshape(1, 1, Pnp)

    x1a, y1a, x2a, y2a = row(0), row(1), row(2), row(3)
    x1b, y1b, x2b, y2b = row(4), row(5), row(6), row(7)
    ux1 = jnp.minimum(x1a, x1b)
    uy1 = jnp.minimum(y1a, y1b)
    ux2 = jnp.maximum(x2a, x2b)
    uy2 = jnp.maximum(y2a, y2b)
    uw = jnp.maximum(ux2 - ux1, 1e-3)
    uh = jnp.maximum(uy2 - uy1, 1e-3)

    xg = (lax.broadcasted_iota(jnp.float32, (S, S, 1), 1) + 0.5) / S
    yg = (lax.broadcasted_iota(jnp.float32, (S, S, 1), 0) + 0.5) / S

    def box_mask(x1, y1, x2, y2):
        sx1 = (x1 - ux1) / uw
        sx2 = (x2 - ux1) / uw
        sy1 = (y1 - uy1) / uh
        sy2 = (y2 - uy1) / uh
        inside = (xg >= sx1) & (xg <= sx2) & (yg >= sy1) & (yg <= sy2)
        return inside.astype(jnp.float32) - 0.5

    o_ref[0] = box_mask(x1a, y1a, x2a, y2a)
    o_ref[1] = box_mask(x1b, y1b, x2b, y2b)


def spatial_masks(pair_rois, S=27):
    Pn = pair_rois.shape[0]
    Pnp = max(128, ((Pn + 127) // 128) * 128)
    rois = jnp.zeros((Pnp, 8), jnp.float32).at[:Pn].set(pair_rois.astype(jnp.float32))
    rois_t = rois.T                                   # (8, Pnp) — pairs on lanes
    out = pl.pallas_call(
        _spatial_mask_kernel,
        out_shape=jax.ShapeDtypeStruct((2, S, S, Pnp), jnp.float32),
    )(rois_t)
    return jnp.transpose(out, (3, 0, 1, 2))[:Pn]      # (Pn, 2, S, S)


# ----------------------------------------------------------------------------
# Forward pass (predcls branch of detector.forward)
# ----------------------------------------------------------------------------
def detector_forward_predcls(params, im_data, im_info, gt_annotation):
    # ----- python glue: build boxes / labels / pairs from gt_annotation -------
    bbox_num = sum(len(f) for f in gt_annotation)
    nframes = len(gt_annotation)
    FINAL_BBOXES = np.zeros((bbox_num, 5), np.float32)
    FINAL_LABELS = np.zeros((bbox_num,), np.int32)
    FINAL_SCORES = np.ones((bbox_num,), np.float32)
    HUMAN_IDX = np.zeros((nframes, 1), np.int32)
    im_idx, pair, a_rel, s_rel, c_rel = [], [], [], [], []
    bbox_idx = 0
    for i, frame in enumerate(gt_annotation):
        for m in frame:
            if 'person_bbox' in m:
                FINAL_BBOXES[bbox_idx, 1:] = m['person_bbox'][0]
                FINAL_BBOXES[bbox_idx, 0] = i
                FINAL_LABELS[bbox_idx] = 1
                HUMAN_IDX[i] = bbox_idx
                bbox_idx += 1
            else:
                FINAL_BBOXES[bbox_idx, 1:] = m['bbox']
                FINAL_BBOXES[bbox_idx, 0] = i
                FINAL_LABELS[bbox_idx] = m['class']
                im_idx.append(i)
                pair.append([int(HUMAN_IDX[i, 0]), bbox_idx])
                a_rel.append(m['attention_relationship'].tolist())
                s_rel.append(m['spatial_relationship'].tolist())
                c_rel.append(m['contacting_relationship'].tolist())
                bbox_idx += 1

    FINAL_BBOXES = jnp.asarray(FINAL_BBOXES)
    FINAL_LABELS = jnp.asarray(FINAL_LABELS)
    FINAL_SCORES = jnp.asarray(FINAL_SCORES)
    HUMAN_IDX = jnp.asarray(HUMAN_IDX)
    pair_idx = jnp.asarray(np.array(pair, np.int32))
    im_idx_arr = jnp.asarray(np.array(im_idx, np.float32))
    scale = im_info[0, 2]

    # ----- RCNN_base (original loops in chunks of 10; a single chunk here) ----
    x_nhwc = jnp.transpose(im_data, (0, 2, 3, 1))          # NCHW -> NHWC
    base_feat = conv3x3_relu(x_nhwc, params['conv_w'], params['conv_b'])

    # ----- ROI Align on GT boxes (boxes scaled by im_info[0, 2]) --------------
    boxes_scaled = FINAL_BBOXES.at[:, 1:].multiply(scale)
    pooled = roi_align(base_feat, boxes_scaled)             # (R, 7, 7, C)

    # ----- _head_to_tail -------------------------------------------------------
    feats = linear_relu(pooled.reshape(pooled.shape[0], -1),
                        params['head_w'], params['head_b'])

    # ----- union boxes + union features (predcls branch) ----------------------
    # tiny min/max/concat: plain JAX (XLA fuses it; a pallas_call would be pure overhead)
    box_a = boxes_scaled[pair_idx[:, 0], 1:]
    box_b = boxes_scaled[pair_idx[:, 1], 1:]
    union_boxes = jnp.concatenate(
        [im_idx_arr[:, None],
         jnp.minimum(box_a[:, 0:2], box_b[:, 0:2]),
         jnp.maximum(box_a[:, 2:4], box_b[:, 2:4])], axis=1)
    union_feat = roi_align(base_feat, union_boxes)

    final_bboxes_out = boxes_scaled.at[:, 1:].divide(scale)
    pair_rois = jnp.concatenate([final_bboxes_out[pair_idx[:, 0], 1:],
                                 final_bboxes_out[pair_idx[:, 1], 1:]], axis=1)
    sm = spatial_masks(pair_rois, 27)

    entry = {
        'boxes': final_bboxes_out,
        'labels': FINAL_LABELS,
        'scores': FINAL_SCORES,
        'im_idx': im_idx_arr,
        'pair_idx': pair_idx,
        'human_idx': HUMAN_IDX,
        'features': feats,
        'union_feat': union_feat,
        'union_box': union_boxes,
        'spatial_masks': sm,
        'attention_gt': a_rel,
        'spatial_gt': s_rel,
        'contacting_gt': c_rel,
    }
    return entry


# ----------------------------------------------------------------------------
if __name__ == "__main__":
    key = jax.random.PRNGKey(0)
    N, Cin, H, W = 2, 4, 16, 16          # im_data (small, NCHW)
    Cout = 128                           # base-feature channels (lane-dense)
    HIDDEN = 128                         # head feature dim (lane-dense)
    POOL = 7

    k1, k2, k3 = jax.random.split(key, 3)
    im_data = jax.random.normal(k1, (N, Cin, H, W), jnp.float32)
    im_info = jnp.array([[H, W, 1.0], [H, W, 1.0]], jnp.float32)

    params = {
        'conv_w': 0.1 * jax.random.normal(k2, (3, 3, Cin, Cout), jnp.float32),
        'conv_b': jnp.zeros((Cout,), jnp.float32),
        'head_w': 0.05 * jax.random.normal(k3, (POOL * POOL * Cout, HIDDEN), jnp.float32),
        'head_b': jnp.zeros((HIDDEN,), jnp.float32),
    }

    gt_annotation = [
        [
            {'person_bbox': np.array([[1.0, 1.0, 8.0, 10.0]], np.float32)},
            {'bbox': np.array([4.0, 3.0, 12.0, 9.0], np.float32), 'class': 5,
             'attention_relationship': np.array([0]),
             'spatial_relationship': np.array([2]),
             'contacting_relationship': np.array([1])},
            {'bbox': np.array([2.0, 6.0, 14.0, 15.0], np.float32), 'class': 9,
             'attention_relationship': np.array([1]),
             'spatial_relationship': np.array([0]),
             'contacting_relationship': np.array([3])},
        ],
        [
            {'person_bbox': np.array([[0.0, 2.0, 7.0, 12.0]], np.float32)},
            {'bbox': np.array([5.0, 5.0, 13.0, 14.0], np.float32), 'class': 7,
             'attention_relationship': np.array([2]),
             'spatial_relationship': np.array([1]),
             'contacting_relationship': np.array([0])},
            {'bbox': np.array([1.0, 8.0, 10.0, 15.0], np.float32), 'class': 3,
             'attention_relationship': np.array([0]),
             'spatial_relationship': np.array([3]),
             'contacting_relationship': np.array([2])},
        ],
    ]

    entry = detector_forward_predcls(params, im_data, im_info, gt_annotation)
    jax.block_until_ready((entry['boxes'], entry['features'],
                           entry['union_feat'], entry['union_box'],
                           entry['spatial_masks']))
    print("KERNEL_OK")
</pallas_src>

<mosaic_0001>
module attributes {stable_mosaic.version = 11 : i64} {
  func.func @_conv3x3_relu_kernel(%arg0: i32, %arg1: i32, %arg2: memref<1x1x10x18x4xf32, #tpu.memory_space<vmem>>, %arg3: memref<36x128xf32, #tpu.memory_space<vmem>>, %arg4: memref<1x128xf32, #tpu.memory_space<vmem>>, %arg5: memref<1x8x16x128xf32, #tpu.memory_space<vmem>>) attributes {dimension_semantics = [#tpu.dimension_semantics<parallel>, #tpu.dimension_semantics<parallel>], iteration_bounds = array<i64: 2, 2>, scalar_prefetch = 0 : i64, scratch_operands = 0 : i64, tpu.core_type = #tpu.core_type<tc>, window_params = [{transform_indices = @transform_0, window_bounds = array<i64: 1, 1, 10, 18, 4>}, {pipeline_mode = #tpu.pipeline_mode<synchronous>, transform_indices = @transform_1, window_bounds = array<i64: 36, 128>}, {pipeline_mode = #tpu.pipeline_mode<synchronous>, transform_indices = @transform_2, window_bounds = array<i64: 1, 128>}, {transform_indices = @transform_3, window_bounds = array<i64: 1, 8, 16, 128>}]} {
    %c0 = arith.constant 0 : index
    %c0_0 = arith.constant 0 : index
    %c0_1 = arith.constant 0 : index
    %c0_2 = arith.constant 0 : index
    %c0_3 = arith.constant 0 : index
    %0 = vector.load %arg2[%c0, %c0_0, %c0_1, %c0_2, %c0_3] : memref<1x1x10x18x4xf32, #tpu.memory_space<vmem>>, vector<1x1x8x18x4xf32>
    %1 = vector.shape_cast %0 : vector<1x1x8x18x4xf32> to vector<8x18x4xf32>
    %2 = vector.extract_strided_slice %1 {offsets = [0, 0, 0], sizes = [8, 16, 4], strides = [1, 1, 1]} : vector<8x18x4xf32> to vector<8x16x4xf32>
    %3 = vector.shape_cast %2 : vector<8x16x4xf32> to vector<128x4xf32>
    %4 = vector.extract_strided_slice %1 {offsets = [0, 1, 0], sizes = [8, 16, 4], strides = [1, 1, 1]} : vector<8x18x4xf32> to vector<8x16x4xf32>
    %5 = vector.shape_cast %4 : vector<8x16x4xf32> to vector<128x4xf32>
    %6 = vector.extract_strided_slice %1 {offsets = [0, 2, 0], sizes = [8, 16, 4], strides = [1, 1, 1]} : vector<8x18x4xf32> to vector<8x16x4xf32>
    %7 = vector.shape_cast %6 : vector<8x16x4xf32> to vector<128x4xf32>
    %c0_4 = arith.constant 0 : index
    %c0_5 = arith.constant 0 : index
    %c1 = arith.constant 1 : index
    %c0_6 = arith.constant 0 : index
    %c0_7 = arith.constant 0 : index
    %8 = vector.load %arg2[%c0_4, %c0_5, %c1, %c0_6, %c0_7] : memref<1x1x10x18x4xf32, #tpu.memory_space<vmem>>, vector<1x1x8x18x4xf32>
    %9 = vector.shape_cast %8 : vector<1x1x8x18x4xf32> to vector<8x18x4xf32>
    %10 = vector.extract_strided_slice %9 {offsets = [0, 0, 0], sizes = [8, 16, 4], strides = [1, 1, 1]} : vector<8x18x4xf32> to vector<8x16x4xf32>
    %11 = vector.shape_cast %10 : vector<8x16x4xf32> to vector<128x4xf32>
    %12 = vector.extract_strided_slice %9 {offsets = [0, 1, 0], sizes = [8, 16, 4], strides = [1, 1, 1]} : vector<8x18x4xf32> to vector<8x16x4xf32>
    %13 = vector.shape_cast %12 : vector<8x16x4xf32> to vector<128x4xf32>
    %14 = vector.extract_strided_slice %9 {offsets = [0, 2, 0], sizes = [8, 16, 4], strides = [1, 1, 1]} : vector<8x18x4xf32> to vector<8x16x4xf32>
    %15 = vector.shape_cast %14 : vector<8x16x4xf32> to vector<128x4xf32>
    %c0_8 = arith.constant 0 : index
    %c0_9 = arith.constant 0 : index
    %c2 = arith.constant 2 : index
    %c0_10 = arith.constant 0 : index
    %c0_11 = arith.constant 0 : index
    %16 = vector.load %arg2[%c0_8, %c0_9, %c2, %c0_10, %c0_11] : memref<1x1x10x18x4xf32, #tpu.memory_space<vmem>>, vector<1x1x8x18x4xf32>
    %17 = vector.shape_cast %16 : vector<1x1x8x18x4xf32> to vector<8x18x4xf32>
    %18 = vector.extract_strided_slice %17 {offsets = [0, 0, 0], sizes = [8, 16, 4], strides = [1, 1, 1]} : vector<8x18x4xf32> to vector<8x16x4xf32>
    %19 = vector.shape_cast %18 : vector<8x16x4xf32> to vector<128x4xf32>
    %20 = vector.extract_strided_slice %17 {offsets = [0, 1, 0], sizes = [8, 16, 4], strides = [1, 1, 1]} : vector<8x18x4xf32> to vector<8x16x4xf32>
    %21 = vector.shape_cast %20 : vector<8x16x4xf32> to vector<128x4xf32>
    %22 = vector.extract_strided_slice %17 {offsets = [0, 2, 0], sizes = [8, 16, 4], strides = [1, 1, 1]} : vector<8x18x4xf32> to vector<8x16x4xf32>
    %23 = vector.shape_cast %22 : vector<8x16x4xf32> to vector<128x4xf32>
    %24 = tpu.concatenate %3, %5, %7, %11, %13, %15, %19, %21, %23 in 1 : vector<128x4xf32>, vector<128x4xf32>, vector<128x4xf32>, vector<128x4xf32>, vector<128x4xf32>, vector<128x4xf32>, vector<128x4xf32>, vector<128x4xf32>, vector<128x4xf32> -> vector<128x36xf32>
    %c0_12 = arith.constant 0 : index
    %c0_13 = arith.constant 0 : index
    %25 = vector.load %arg3[%c0_12, %c0_13] : memref<36x128xf32, #tpu.memory_space<vmem>>, vector<36x128xf32>
    %cst = arith.constant dense<0.000000e+00> : vector<128x128xf32>
    %26 = tpu.matmul %24, %25, %cst {dimension_numbers = #tpu.dot_dimension_numbers<[1], [0], [0], [1], [0, 0, 1, 1], [], []>} : vector<128x36xf32>, vector<36x128xf32>, vector<128x128xf32> -> vector<128x128xf32>
    %c0_14 = arith.constant 0 : index
    %c0_15 = arith.constant 0 : index
    %27 = vector.load %arg4[%c0_14, %c0_15] : memref<1x128xf32, #tpu.memory_space<vmem>>, vector<1x128xf32>
    %28 = vector.broadcast %27 : vector<1x128xf32> to vector<128x128xf32>
    %29 = arith.addf %26, %28 : vector<128x128xf32>
    %cst_16 = arith.constant 0.000000e+00 : f32
    %30 = vector.broadcast %cst_16 : f32 to vector<128x128xf32>
    %31 = arith.maximumf %29, %30 : vector<128x128xf32>
    %32 = vector.shape_cast %31 : vector<128x128xf32> to vector<8x16x128xf32>
    %c0_17 = arith.constant 0 : index
    %c0_18 = arith.constant 0 : index
    %c0_19 = arith.constant 0 : index
    %c0_20 = arith.constant 0 : index
    %33 = vector.load %arg5[%c0_17, %c0_18, %c0_19, %c0_20] : memref<1x8x16x128xf32, #tpu.memory_space<vmem>>, vector<1x8x16x128xf32>
    %34 = vector.shape_cast %33 : vector<1x8x16x128xf32> to vector<8x16x128xf32>
    %35 = vector.shape_cast %32 : vector<8x16x128xf32> to vector<1x8x16x128xf32>
    tpu.vector_store %arg5[%c0_17, %c0_18, %c0_19, %c0_20], %35 {strides = array<i32>} : memref<1x8x16x128xf32, #tpu.memory_space<vmem>>, vector<1x8x16x128xf32>,
    return
  }
  func.func @transform_0(%arg0: i32, %arg1: i32) -> (i32, i32, i32, i32, i32) {
    %c0_i32 = arith.constant 0 : i32
    %c0_i32_0 = arith.constant 0 : i32
    %c0_i32_1 = arith.constant 0 : i32
    %c0_i32_2 = arith.constant 0 : i32
    return %arg0, %arg1, %c0_i32, %c0_i32_0, %c0_i32_1 : i32, i32, i32, i32, i32
  }
  func.func @transform_1(%arg0: i32, %arg1: i32) -> (i32, i32) {
    %c0_i32 = arith.constant 0 : i32
    %c0_i32_0 = arith.constant 0 : i32
    %c0_i32_1 = arith.constant 0 : i32
    return %c0_i32, %c0_i32_0 : i32, i32
  }
  func.func @transform_2(%arg0: i32, %arg1: i32) -> (i32, i32) {
    %c0_i32 = arith.constant 0 : i32
    %c0_i32_0 = arith.constant 0 : i32
    %c0_i32_1 = arith.constant 0 : i32
    return %c0_i32, %c0_i32_0 : i32, i32
  }
  func.func @transform_3(%arg0: i32, %arg1: i32) -> (i32, i32, i32, i32) {
    %c0_i32 = arith.constant 0 : i32
    %c0_i32_0 = arith.constant 0 : i32
    %c0_i32_1 = arith.constant 0 : i32
    return %arg0, %arg1, %c0_i32, %c0_i32_0 : i32, i32, i32, i32
  }
}

</mosaic_0001>

<bundles_post_ra>
// kernel: tpu_custom_call.1
= control target key start
LH: loop header
LB: loop body
LE: loop exit
PB: predicated region body
PF: predicated region fallthrough
CT: control target
= control target key end

     0   :  { %8 = vsyncpa [#allocation3], 0  ;;  %s2752_s0 = inlined_call_operand.vmem [shape: f32[2,2,10,18,4], index: 0, kind: input, shape index: {}]   ;;  %s2753_s1 = inlined_call_operand.vmem [shape: f32[36,128], index: 1, kind: input, shape index: {}]   ;;  %s2754_s2 = inlined_call_operand.vmem [shape: f32[1,128], index: 2, kind: input, shape index: {}]   ;;  %s2755_s3 = inlined_call_operand.hbm [shape: f32[2,16,16,128], index: 3, kind: output, shape index: {}]  }
   0x1   :  { %10 = vsyncpa [#allocation3 + $0x1], 0  ;;  %s1808_s12 = smov 0   ;;  %s1810_s13 = smov 0  }
   0x2   :  { %s1812_s14 = smov 0   ;;  %s1814_s15 = smov 0  }
   0x3   :  { %s1816_s16 = smov 0   ;;  %s1818_s17 = smov 0  }
   0x4   :  { %s1820_s18 = smov 0   ;;  %s1822_s19 = smov 0  }
   0x5 LB: > { %s1450_s20 = sadd.s32 4294967295, %s1776_s19   ;;  %s1451_s21 = sadd.s32 4294967294, %s1776_s19   ;;  %s1776_s19 = sphi %s1822_s19, %s16_s19   ;;  %s1772_s18 = sphi %s1820_s18, %s2776_s18   ;;  %s1768_s17 = sphi %s1818_s17, %s2775_s17   ;;  %s1764_s16 = sphi %s1816_s16, %s2774_s16   ;;  %s1760_s15 = sphi %s1814_s15, %s2773_s15   ;;  %s1756_s14 = sphi %s1812_s14, %s2772_s14   ;;  %s1752_s13 = sphi %s1810_s13, %s2771_s13   ;;  %s1748_s12 = sphi %s1808_s12, %s2770_s12  }
   0x6   : > { %s25_s22 = sadd.s32 1, %s1768_s17  ;;  %s28_s23 = sadd.s32 1, %s1772_s18 }
   0x7   : > { %p26_p0 = scmp.ge.s32.totalorder %s25_s22, 2  ;;  %p117_p1 = scmp.ne.s32.totalorder %s1756_s14, %s1752_s13 }
   0x8   : > { %p118_p2 = scmp.eq.s32.totalorder %s1450_s20, 3  ;;  %p123_p5 = scmp.ne.s32.totalorder %s1752_s13, %s1748_s12 }
   0x9   : > { %s2778_s22 = smov (%p26_p0, %s25_s22), 0  ;;  %s2780_s23 = smov (!%p26_p0, %s28_s23), %s1772_s18 }
   0xa   : > { %s103_s24 = ssub.s32 %s1768_s17, %s2778_s22  ;;  %p1859_p3 = por %p118_p2, %p117_p1 }
   0xb   : > { %p30_p4 = scmp.ge.s32.totalorder %s2780_s23, 2  ;;  %p124_p6 = scmp.eq.s32.totalorder %s1451_s21, 3 }
   0xc   : > { %p1454_p7 = scmp.ge.s32.totalorder %s1776_s19, 1  ;;  %p160_p9 = scmp.lt.s32.totalorder %s1776_s19, 5 }
   0xd   : > { %s2782_s23 = smov (%p30_p4, %s2780_s23), 0  ;;  %p1868_p8 = por %p124_p6, %p123_p5 }
   0xe   : > { %s102_s27 = ssub.s32 %s1772_s18, %s2782_s23  ;;  %s107_s28 = sadd.s32 1, %s1756_s14 }
   0xf   : > { %s104_s29 = sor.u32 %s103_s24, %s102_s27  ;;  %p161_p10 = pnand %p1454_p7, %p160_p9 }
  0x10   : > { %p105_p11 = scmp.eq.s32.totalorder %s104_s29, 0 }
  0x11   : > { %164 = sbr.rel (%p161_p10) target bundleno = 639 (0x27f), region = 32 }
  0x12   : > { %s1877_s30 = scalar_select %p105_p11, %s1756_s14, %s107_s28  }
  0x18   : > { %p188_p12 = scmp.lt.s32.totalorder %s1764_s16, 1  ;;  %p190_p13 = scmp.lt.s32.totalorder %s1760_s15, 1  ;;  %vm246_vm0 = vcmask 1046528   ;;  %vm287_vm1 = vcmask 1045504   ;;  %vm1167_vm2 = vcmask 1043456   ;;  %vm970_vm3 = vcmask 31744  }
  0x19   : > { %s1778_s21 = smov 4   ;;  %s1779_s24 = smov 8   ;;  %vm987_vm4 = vcmask 64512   ;;  %vm1004_vm5 = vcmask 97280   ;;  %vm1021_vm6 = vcmask 130048   ;;  %vm1038_vm7 = vcmask 162816  }
  0x1a   : > { %s189_s4 = scalar_select %p188_p12, %s1764_s16, 1  ;;  %vm1055_vm8 = vcmask 195584   ;;  %vm1072_vm9 = vcmask 228352   ;;  %vm1089_vm10 = vcmask 261120   ;;  %vm1118_vm11 = vcmask 293888  }
  0x1b   : > { %s191_s5 = scalar_select %p190_p13, %s1760_s15, 1 }
  0x1c   : > { %s1601_s6 = smul.u32 60, %s189_s4  ;;  %s1780_s27 = smov 12  }
  0x1d   : > { %s1600_s7 = smul.u32 30, %s191_s5  ;;  %s1781_s28 = smov 16  }
  0x1e   : > { %s1782_s29 = smov 20   ;;  %s1783_s4 = smov 24  }
  0x1f   : > { %s194_s8 = sadd.s32 %s1601_s6, %s1600_s7  ;;  %s1784_s5 = smov 28  }
  0x20   : > { %s1456_s9 = sshll.u32 %s194_s8, 3  ;;  %s1785_s8 = smov 32  }
  0x21   : > { %s1886_s20 = scalar_lea.vmem %s2752_s0, %s1456_s9 }
  0x22   : > { %v1889_v0 = vld [vmem:[%s1886_s20 + $0x8] sm:$0xff]  ;;  %v200_v1 = vld [vmem:[%s1886_s20 + $0x10] sm:$0x3]  ;;  %v1893_v2 = vld [vmem:[%s1886_s20] sm:$0xff] }
  0x23   : > { %v248_v3 = vrot.slane %v1889_v0, 1  ;;  %v250_v4 = vrot.slane %v200_v1, 1  ;;  %v247_v5 = vrot.slane %v1893_v2, 1  ;;  %v1898_v6 = vld [vmem:[%s1886_s20 + $0x68] sm:$0xff]  ;;  %v212_v7 = vld [vmem:[%s1886_s20 + $0x70] sm:$0x3] }
  0x24   : > { %v1902_v8 = vrot.slane %v1898_v6, 1  ;;  %v270_v9 = vrot.slane %v212_v7, 1  ;;  %v1905_v10 = vld [vmem:[%s1886_s20 + $0x60] sm:$0xff]  ;;  %v1913_v14 = vrot.slane %v1898_v6, 2  ;;  %v288_v15 = vrot.slane %v1893_v2, 2  ;;  %v1941_v26 = vld [vmem:[%s1886_s20 + $0x78] sm:$0xff] }
  0x25   : > { %v251_v11 = vsel %vm246_vm0, %v248_v3, %v250_v4  ;;  %v249_v12 = vsel %vm246_vm0, %v247_v5, %v248_v3  ;;  %v267_v13 = vrot.slane %v1905_v10, 1  ;;  %v308_v18 = vrot.slane %v1905_v10, 2  ;;  %v1944_v27 = vld [vmem:[%s1886_s20 + $0x18] sm:$0xff]  ;;  %v1947_v28 = vld [vmem:[%s1886_s20 + $0x80] sm:$0xff]  ;;  %v1471_v36 = vld [vmem:[%s1886_s20 + $0x88] sm:$0x3] }
  0x26   : > { %588 = vrot.lane.b32.xlu1 %v251_v11, %s1778_s21  ;;  %586 = vrot.lane.b32.xlu0 %v249_v12, %s1778_s21  ;;  %v271_v16 = vsel %vm246_vm0, %v1902_v8, %v270_v9  ;;  %v289_v19 = vrot.slane %v1889_v0, 2  ;;  %v311_v22 = vrot.slane %v212_v7, 2  ;;  %v291_v23 = vrot.slane %v200_v1, 2  ;;  %v1950_v29 = vld [vmem:[%s1886_s20 + $0x20] sm:$0xff]  ;;  %v1459_v37 = vld [vmem:[%s1886_s20 + $0x28] sm:$0x3] }
  0x27   : > { %v1920_v17 = vsel %vm246_vm0, %v267_v13, %v1902_v8  ;;  %v1929_v20 = vsel %vm287_vm1, %v308_v18, %v1913_v14  ;;  %v397_v30 = vrot.slane %v1941_v26, 1  ;;  %v377_v31 = vrot.slane %v1944_v27, 1  ;;  %v215_v46 = vld [vmem:[%s1886_s20 + $0x88] sm:$0x3]  ;;  %v1997_v58 = vld [vmem:[%s1886_s20 + $0x90] sm:$0xff]  ;;  %v2011_v1 = vld [vmem:[%s1886_s20 + $0x98] sm:$0xff] }
  0x28   : > { %v290_v21 = vsel %vm287_vm1, %v288_v15, %v289_v19  ;;  %v312_v24 = vsel %vm287_vm1, %v1913_v14, %v311_v22  ;;  %v292_v25 = vsel %vm287_vm1, %v289_v19, %v291_v23  ;;  %v398_v32 = vrot.slane %v1947_v28, 1  ;;  %v203_v47 = vld [vmem:[%s1886_s20 + $0x28] sm:$0x3]  ;;  %v2000_v59 = vld [vmem:[%s1886_s20 + $0x30] sm:$0xff]  ;;  %v2014_v3 = vld [vmem:[%s1886_s20 + $0x38] sm:$0xff] }
  0x29   : > { %v378_v33 = vrot.slane %v1950_v29, 1  ;;  %v400_v38 = vrot.slane %v1471_v36, 1  ;;  %v380_v39 = vrot.slane %v1459_v37, 1  ;;  %v437_v40 = vrot.slane %v1941_v26, 2  ;;  %v1495_v13 = vld [vmem:[%s1886_s20 + $0xa0] sm:$0x3] }
  0x2a   : > { %604 = vrot.lane.b32.xlu1 %v271_v16, %s1778_s21  ;;  %602 = vrot.lane.b32.xlu0 %v1920_v17, %s1778_s21  ;;  %v399_v34 = vsel %vm246_vm0, %v397_v30, %v398_v32  ;;  %v417_v41 = vrot.slane %v1944_v27, 2  ;;  %v438_v42 = vrot.slane %v1947_v28, 2  ;;  %v418_v43 = vrot.slane %v1950_v29, 2  ;;  %v1483_v15 = vld [vmem:[%s1886_s20 + $0x40] sm:$0x3] }
  0x2b   : > { %v379_v35 = vsel %vm246_vm0, %v377_v31, %v378_v33  ;;  %v401_v44 = vsel %vm246_vm0, %v398_v32, %v400_v38  ;;  %v381_v45 = vsel %vm246_vm0, %v378_v33, %v380_v39  ;;  %v275_v50 = vrot.slane %v215_v46, 1  ;;  %v1106_v23 = vld [vmem:[%s2753_s1] sm:$0xff] }
  0x2c   : > { %v439_v48 = vsel %vm287_vm1, %v437_v40, %v438_v42  ;;  %v419_v49 = vsel %vm287_vm1, %v417_v41, %v418_v43  ;;  %v255_v51 = vrot.slane %v203_v47, 1  ;;  %v440_v54 = vrot.slane %v1471_v36, 2  ;;  %v1474_v38 = vld [vmem:[%s1886_s20 + $0xa0] sm:$0x3] }
  0x2d   : > { %v276_v52 = vsel %vm246_vm0, %v398_v32, %v275_v50  ;;  %v420_v55 = vrot.slane %v1459_v37, 2  ;;  %v316_v60 = vrot.slane %v215_v46, 2  ;;  %v296_v61 = vrot.slane %v203_v47, 2  ;;  %v1462_v39 = vld [vmem:[%s1886_s20 + $0x40] sm:$0x3] }
  0x2e   : > { %650 = vrot.lane.b32.xlu1 %v1929_v20, %s1779_s24  ;;  %634 = vrot.lane.b32.xlu0 %v290_v21, %s1779_s24  ;;  %v256_v53 = vsel %vm246_vm0, %v378_v33, %v255_v51  ;;  %v441_v56 = vsel %vm287_vm1, %v438_v42, %v440_v54  ;;  %v526_v4 = vrot.slane %v1997_v58, 1  ;;  %v506_v5 = vrot.slane %v2000_v59, 1  ;;  %v1108_v33 = vld [vmem:[%s2753_s1 + $0x10] sm:$0xff]  ;;  %v218_v47 = vld [vmem:[%s1886_s20 + $0xa0] sm:$0x3] }
  0x2f   : > { %v421_v57 = vsel %vm287_vm1, %v418_v43, %v420_v55  ;;  %v317_v62 = vsel %vm287_vm1, %v438_v42, %v316_v60  ;;  %v297_v63 = vsel %vm287_vm1, %v418_v43, %v296_v61  ;;  %v2023_v7 = vrot.slane %v2011_v1, 1  ;;  %v1110_v42 = vld [vmem:[%s2753_s1 + $0x20] sm:$0xf]  ;;  %v2116_v61 = vld [vmem:[%s1886_s20 + $0xa8] sm:$0xff] }
  0x30   : > { %v2026_v9 = vrot.slane %v2014_v3, 1  ;;  %v529_v16 = vrot.slane %v1495_v13, 1  ;;  %v509_v18 = vrot.slane %v1483_v15, 1  ;;  %v566_v19 = vrot.slane %v1997_v58, 2  ;;  %2762 = vst [vmem:[#allocation5_spill] sm:$0xff] %v2116_v61 }
  0x31   : > { %v528_v11 = vsel %vm246_vm0, %v526_v4, %v2023_v7  ;;  %v546_v21 = vrot.slane %v2000_v59, 2  ;;  %v2047_v22 = vrot.slane %v2011_v1, 2  ;;  %v405_v40 = vrot.slane %v1474_v38, 1 }
  0x32   : > { %652 = vrot.lane.b32.xlu1 %v312_v24, %s1779_s24  ;;  %636 = vrot.lane.b32.xlu0 %v292_v25, %s1779_s24  ;;  %v508_v12 = vsel %vm246_vm0, %v506_v5, %v2026_v9  ;;  %v1107_v24 = vld [vmem:[%s2753_s1 + $0x8] sm:$0xff]  ;;  %v2058_v25 = vrot.slane %v2014_v3, 2  ;;  %v530_v30 = vsel %vm246_vm0, %v2023_v7, %v529_v16  ;;  %v510_v31 = vsel %vm246_vm0, %v2026_v9, %v509_v18  ;;  %v2144_v18 = vld [vmem:[%s1886_s20 + $0xb0] sm:$0xff] }
  0x33   : > { %v1586_v32 = vpack.c.bf16 %v1107_v24, %v1106_v23  ;;  %v385_v41 = vrot.slane %v1462_v39, 1  ;;  %v406_v43 = vsel %vm246_vm0, %v2023_v7, %v405_v40  ;;  %v549_v46 = vrot.slane %v1483_v15, 2  ;;  %2764 = vst [vmem:[#allocation7_spill] sm:$0xff] %v2144_v18 }
  0x34   : > { %v548_v36 = vsel %vm287_vm1, %v546_v21, %v2058_v25  ;;  %v280_v51 = vrot.slane %v218_v47, 1  ;;  %v445_v55 = vrot.slane %v1474_v38, 2  ;;  %v531_v21 = vrot.slane %v2116_v61, 1  ;;  %v1486_v38 = vld [vmem:[%s1886_s20 + $0x58] sm:$0x3] }
  0x35   : > { %1587 = vmatprep.subr.bf16.mxu0 %v1586_v32  ;;  %1594 = vmatprep.subr.bf16.mxu1 %v1586_v32  ;;  %v550_v50 = vsel %vm287_vm1, %v2058_v25, %v549_v46  ;;  %v2156_v23 = vrot.slane %v2144_v18, 1  ;;  %v514_v40 = vrot.slane %v1486_v38, 1 }
  0x36   : > { %698 = vrot.lane.b32.xlu1 %v1941_v26, %s1780_s27  ;;  %682 = vrot.lane.b32.xlu0 %v1944_v27, %s1780_s27 }
  0x37   : > { %1589 = vmatpush3.bf16.msra.mxu0 %v1586_v32  ;;  %1597 = vmatpush3.bf16.msra.mxu1 %v1586_v32 }
  0x3a   : > { %700 = vrot.lane.b32.xlu1 %v1947_v28, %s1780_s27  ;;  %684 = vrot.lane.b32.xlu0 %v1950_v29, %s1780_s27 }
  0x3e   : > { %746 = vrot.lane.b32.xlu1 %v399_v34, %s1781_s28  ;;  %730 = vrot.lane.b32.xlu0 %v379_v35, %s1781_s28 }
  0x42   : > { %606 = vrot.lane.b32.xlu1 %v399_v34, %s1778_s21  ;;  %590 = vrot.lane.b32.xlu0 %v379_v35, %s1778_s21  ;;  %v1109_v34 = vld [vmem:[%s2753_s1 + $0x18] sm:$0xff]  ;;  %v568_v35 = vsel %vm287_vm1, %v566_v19, %v2047_v22  ;;  %v2147_v19 = vld [vmem:[%s1886_s20 + $0x50] sm:$0xff] }
  0x43   : > { %v1590_v37 = vpack.c.bf16 %v1109_v34, %v1108_v33  ;;  %2765 = vst [vmem:[#allocation8_spill] sm:$0xff] %v2147_v19  ;;  %v2159_v24 = vrot.slane %v2147_v19, 1  ;;  %v2201_v46 = vrot.slane %v2147_v19, 2 }
  0x45   : > { %1591 = vmatprep.subr.bf16.mxu0 %v1590_v37  ;;  %1595 = vmatprep.subr.bf16.mxu1 %v1590_v37 }
  0x46   : > { %748 = vrot.lane.b32.xlu1 %v401_v44, %s1781_s28  ;;  %732 = vrot.lane.b32.xlu0 %v381_v45, %s1781_s28  ;;  %v386_v44 = vsel %vm246_vm0, %v2026_v9, %v385_v41  ;;  %v569_v45 = vrot.slane %v1495_v13, 2 }
  0x47   : > { %1593 = vmatpush3.bf16.msra.mxu0 %v1590_v37  ;;  %1598 = vmatpush3.bf16.msra.mxu1 %v1590_v37  ;;  %v1498_v37 = vld [vmem:[%s1886_s20 + $0xb8] sm:$0x3] }
  0x48   : > { %1560 = vmatprep.subr.msk.mxu0 %vm1167_vm2, %v1110_v42  ;;  %1596 = vmatprep.subr.msk.mxu1 %vm1167_vm2, %v1110_v42 }
  0x4a   : > { %794 = vrot.lane.b32.xlu1 %v439_v48, %s1782_s29  ;;  %778 = vrot.lane.b32.xlu0 %v419_v49, %s1782_s29 }
  0x4b   : > { %1561 = vmatpush3.msk.msra.mxu0 %vm1167_vm2, %v1110_v42  ;;  %1599 = vmatpush3.msk.msra.mxu1 %vm1167_vm2, %v1110_v42 }
  0x4e   : > { %608 = vrot.lane.b32.xlu1 %v276_v52, %s1778_s21  ;;  %592 = vrot.lane.b32.xlu0 %v256_v53, %s1778_s21  ;;  %v281_v53 = vsel %vm246_vm0, %v2023_v7, %v280_v51 }
  0x52   : > { %654 = vrot.lane.b32.xlu1 %v439_v48, %s1779_s24  ;;  %638 = vrot.lane.b32.xlu0 %v419_v49, %s1779_s24  ;;  %v206_v48 = vld [vmem:[%s1886_s20 + $0x40] sm:$0x3]  ;;  %v570_v49 = vsel %vm287_vm1, %v2047_v22, %v569_v45  ;;  %v2198_v45 = vrot.slane %v2144_v18, 2 }
  0x53   : > { %v260_v52 = vrot.slane %v206_v48, 1  ;;  %v301_v4 = vrot.slane %v206_v48, 2  ;;  %v515_v48 = vsel %vm246_vm0, %v2159_v24, %v514_v40  ;;  %v554_v40 = vrot.slane %v1486_v38, 2 }
  0x55   : > { %v261_v54 = vsel %vm246_vm0, %v2026_v9, %v260_v52 }
  0x56   : > { %796 = vrot.lane.b32.xlu1 %v441_v56, %s1782_s29  ;;  %780 = vrot.lane.b32.xlu0 %v421_v57, %s1782_s29  ;;  %v425_v56 = vrot.slane %v1462_v39, 2  ;;  %v446_v57 = vsel %vm287_vm1, %v2047_v22, %v445_v55  ;;  %v534_v39 = vrot.slane %v1498_v37, 1  ;;  %v1477_v55 = vld [vmem:[%s1886_s20 + $0xb8] sm:$0x3] }
  0x58   : > { %v426_v60 = vsel %vm287_vm1, %v2058_v25, %v425_v56  ;;  %v1465_v56 = vld [vmem:[%s1886_s20 + $0x58] sm:$0x3] }
  0x5a   : > { %842 = vrot.lane.b32.xlu1 %v1997_v58, %s1783_s4  ;;  %826 = vrot.lane.b32.xlu0 %v2000_v59, %s1783_s4 }
  0x5e   : > { %656 = vrot.lane.b32.xlu1 %v317_v62, %s1779_s24  ;;  %640 = vrot.lane.b32.xlu0 %v297_v63, %s1779_s24  ;;  %v2119_v62 = vld [vmem:[%s1886_s20 + $0x48] sm:$0xff]  ;;  %v321_v63 = vrot.slane %v218_v47, 2  ;;  %v535_v47 = vsel %vm246_vm0, %v2156_v23, %v534_v39  ;;  %v574_v39 = vrot.slane %v1498_v37, 2 }
  0x5f   : > { %2763 = vst [vmem:[#allocation6_spill] sm:$0xff] %v2119_v62 }
  0x60   : > { %v322_v9 = vsel %vm287_vm1, %v2047_v22, %v321_v63  ;;  %v511_v22 = vrot.slane %v2119_v62, 1 }
  0x62   : > { %702 = vrot.lane.b32.xlu1 %v1997_v58, %s1780_s27  ;;  %686 = vrot.lane.b32.xlu0 %v2000_v59, %s1780_s27  ;;  %v513_v32 = vsel %vm246_vm0, %v511_v22, %v2159_v24 }
  0x66   : > { %844 = vrot.lane.b32.xlu1 %v2011_v1, %s1783_s4  ;;  %828 = vrot.lane.b32.xlu0 %v2014_v3, %s1783_s4 }
  0x6a   : > { %890 = vrot.lane.b32.xlu1 %v528_v11, %s1784_s5  ;;  %874 = vrot.lane.b32.xlu0 %v508_v12, %s1784_s5 }
  0x6e   : > { %704 = vrot.lane.b32.xlu1 %v2011_v1, %s1780_s27  ;;  %688 = vrot.lane.b32.xlu0 %v2014_v3, %s1780_s27 }
  0x72   : > { %750 = vrot.lane.b32.xlu1 %v528_v11, %s1781_s28  ;;  %734 = vrot.lane.b32.xlu0 %v508_v12, %s1781_s28 }
  0x76   : > { %892 = vrot.lane.b32.xlu1 %v530_v30, %s1784_s5  ;;  %876 = vrot.lane.b32.xlu0 %v510_v31, %s1784_s5  ;;  %v533_v31 = vsel %vm246_vm0, %v531_v21, %v2156_v23 }
  0x7a   : > { %938 = vrot.lane.b32.xlu1 %v568_v35, %s1785_s8  ;;  %922 = vrot.lane.b32.xlu0 %v548_v36, %s1785_s8 }
  0x7e   : > { %610 = vrot.lane.b32.xlu1 %v528_v11, %s1778_s21  ;;  %594 = vrot.lane.b32.xlu0 %v508_v12, %s1778_s21  ;;  %v302_v11 = vsel %vm287_vm1, %v2058_v25, %v301_v4 }
  0x82   : > { %752 = vrot.lane.b32.xlu1 %v406_v43, %s1781_s28  ;;  %736 = vrot.lane.b32.xlu0 %v386_v44, %s1781_s28  ;;  %v571_v43 = vrot.slane %v2116_v61, 2  ;;  %v551_v44 = vrot.slane %v2119_v62, 2 }
  0x84   : > { %v573_v51 = vsel %vm287_vm1, %v571_v43, %v2198_v45  ;;  %v553_v52 = vsel %vm287_vm1, %v551_v44, %v2201_v46  ;;  %v221_v44 = vld [vmem:[%s1886_s20 + $0xb8] sm:$0x3] }
  0x86   : > { %798 = vrot.lane.b32.xlu1 %v568_v35, %s1782_s29  ;;  %782 = vrot.lane.b32.xlu0 %v548_v36, %s1782_s29 }
  0x8a   : > { %940 = vrot.lane.b32.xlu1 %v570_v49, %s1785_s8  ;;  %924 = vrot.lane.b32.xlu0 %v550_v50, %s1785_s8 }
  0x8e   : > { %612 = vrot.lane.b32.xlu1 %v281_v53, %s1778_s21  ;;  %596 = vrot.lane.b32.xlu0 %v261_v54, %s1778_s21 }
  0x92   : > { %658 = vrot.lane.b32.xlu1 %v568_v35, %s1779_s24  ;;  %642 = vrot.lane.b32.xlu0 %v548_v36, %s1779_s24 }
  0x96   : > { %800 = vrot.lane.b32.xlu1 %v446_v57, %s1782_s29  ;;  %784 = vrot.lane.b32.xlu0 %v426_v60, %s1782_s29  ;;  %v410_v57 = vrot.slane %v1477_v55, 1  ;;  %v390_v60 = vrot.slane %v1465_v56, 1 }
  0x98   : > { %v2121_v5 = vpop.permute.xlu1 %588  ;;  %v2123_v7 = vpop.permute.xlu0 %586 }
  0x9a   : > { %846 = vrot.lane.b32.xlu1 %v2116_v61, %s1783_s4  ;;  %830 = vrot.lane.b32.xlu0 %v2119_v62, %s1783_s4 }
  0x9c   : > { %v2133_v12 = vpop.permute.xlu1 %604  ;;  %v2135_v13 = vpop.permute.xlu0 %602 }
  0x9e   : > { %660 = vrot.lane.b32.xlu1 %v322_v9, %s1779_s24  ;;  %644 = vrot.lane.b32.xlu0 %v302_v11, %s1779_s24  ;;  %v411_v9 = vsel %vm246_vm0, %v2156_v23, %v410_v57  ;;  %v391_v11 = vsel %vm246_vm0, %v2159_v24, %v390_v60  ;;  %v285_v57 = vrot.slane %v221_v44, 1 }
  0xa0   : > { %v2139_v15 = vpop.permute.xlu1 %650  ;;  %v2141_v16 = vpop.permute.xlu0 %634  ;;  %v286_v38 = vsel %vm246_vm0, %v2156_v23, %v285_v57 }
  0xa2   : > { %706 = vrot.lane.b32.xlu1 %v2116_v61, %s1780_s27  ;;  %690 = vrot.lane.b32.xlu0 %v2119_v62, %s1780_s27 }
  0xa4   : > { %v2161_v25 = vpop.permute.xlu1 %652  ;;  %v2163_v30 = vpop.permute.xlu0 %636 }
  0xa6   : > { %848 = vrot.lane.b32.xlu1 %v2144_v18, %s1783_s4  ;;  %832 = vrot.lane.b32.xlu0 %v2147_v19, %s1783_s4 }
  0xa8   : > { %v2173_v33 = vpop.permute.xlu1 %698  ;;  %v2175_v34 = vpop.permute.xlu0 %682 }
  0xaa   : > { %894 = vrot.lane.b32.xlu1 %v533_v31, %s1784_s5  ;;  %878 = vrot.lane.b32.xlu0 %v513_v32, %s1784_s5 }
  0xac   : > { %v2179_v35 = vpop.permute.xlu1 %700  ;;  %v2181_v36 = vpop.permute.xlu0 %684 }
  0xae   : > { %708 = vrot.lane.b32.xlu1 %v2144_v18, %s1780_s27  ;;  %692 = vrot.lane.b32.xlu0 %v2147_v19, %s1780_s27  ;;  %v450_v19 = vrot.slane %v1477_v55, 2  ;;  %v430_v18 = vrot.slane %v1465_v56, 2  ;;  %v2278_v55 = vld [vmem:[%s1886_s20 + $0xc0] sm:$0xff]  ;;  %v326_v56 = vrot.slane %v221_v44, 2 }
  0xb0   : > { %v2189_v41 = vpop.permute.xlu1 %746  ;;  %v2191_v42 = vpop.permute.xlu0 %730  ;;  %v451_v23 = vsel %vm287_vm1, %v2198_v45, %v450_v19 }
  0xb2   : > { %754 = vrot.lane.b32.xlu1 %v533_v31, %s1781_s28  ;;  %738 = vrot.lane.b32.xlu0 %v513_v32, %s1781_s28 }
  0xb4   : > { %v2207_v49 = vpop.permute.xlu1 %606  ;;  %v2209_v50 = vpop.permute.xlu0 %590 }
  0xb6   : > { %896 = vrot.lane.b32.xlu1 %v535_v47, %s1784_s5  ;;  %880 = vrot.lane.b32.xlu0 %v515_v48, %s1784_s5  ;;  %v575_v47 = vsel %vm287_vm1, %v2198_v45, %v574_v39  ;;  %v555_v48 = vsel %vm287_vm1, %v2201_v46, %v554_v40 }
  0xb8   : > { %v2217_v53 = vpop.permute.xlu1 %748  ;;  %v2219_v54 = vpop.permute.xlu0 %732 }
  0xba   : > { %942 = vrot.lane.b32.xlu1 %v573_v51, %s1785_s8  ;;  %926 = vrot.lane.b32.xlu0 %v553_v52, %s1785_s8 }
  0xbc   : > { %v2225_v63 = vpop.permute.xlu1 %794  ;;  %v2227_v4 = vpop.permute.xlu0 %778 }
  0xbe   : > { %614 = vrot.lane.b32.xlu1 %v533_v31, %s1778_s21  ;;  %598 = vrot.lane.b32.xlu0 %v513_v32, %s1778_s21  ;;  %v209_v32 = vld [vmem:[%s1886_s20 + $0x58] sm:$0x3] }
  0xbf   : > { %v265_v60 = vrot.slane %v209_v32, 1 }
  0xc0   : > { %v2235_v21 = vpop.permute.xlu1 %608  ;;  %v2237_v22 = vpop.permute.xlu0 %592 }
  0xc2   : > { %756 = vrot.lane.b32.xlu1 %v411_v9, %s1781_s28  ;;  %740 = vrot.lane.b32.xlu0 %v391_v11, %s1781_s28  ;;  %v266_v11 = vsel %vm246_vm0, %v2159_v24, %v265_v60  ;;  %v431_v24 = vsel %vm287_vm1, %v2201_v46, %v430_v18  ;;  %v327_v18 = vsel %vm287_vm1, %v2198_v45, %v326_v56 }
  0xc3   : > { %v981_v45 = vsel %vm970_vm3, %v1941_v26, %v2207_v49 }
  0xc4   : > { %v655_v43 = vpop.permute.xlu1 %654  ;;  %v639_v31 = vpop.permute.xlu0 %638 }
  0xc5   : > { %v998_v56 = vsel %vm987_vm4, %v981_v45, %v655_v43  ;;  %v971_v43 = vsel %vm970_vm3, %v1893_v2, %v2123_v7 }
  0xc6   : > { %802 = vrot.lane.b32.xlu1 %v573_v51, %s1782_s29  ;;  %786 = vrot.lane.b32.xlu0 %v553_v52, %s1782_s29 }
  0xc8   : > { %v2249_v9 = vpop.permute.xlu1 %796  ;;  %v2251_v37 = vpop.permute.xlu0 %780 }
  0xca   : > { %944 = vrot.lane.b32.xlu1 %v575_v47, %s1785_s8  ;;  %928 = vrot.lane.b32.xlu0 %v555_v48, %s1785_s8 }
  0xcc   : > { %v2259_v39 = vpop.permute.xlu1 %842  ;;  %v2261_v40 = vpop.permute.xlu0 %826 }
  0xce   : > { %616 = vrot.lane.b32.xlu1 %v286_v38, %s1778_s21  ;;  %600 = vrot.lane.b32.xlu0 %v266_v11, %s1778_s21  ;;  %v306_v38 = vrot.slane %v209_v32, 2  ;;  %s1786_s21 = smov [#allocation2]  }
  0xd0   : > { %v2265_v47 = vpop.permute.xlu1 %656  ;;  %v2267_v48 = vpop.permute.xlu0 %640  ;;  %v307_v19 = vsel %vm287_vm1, %v2201_v46, %v306_v38  ;;  %v973_v46 = vsel %vm970_vm3, %v1944_v27, %v2209_v50 }
  0xd1   : > { %v990_v38 = vsel %vm987_vm4, %v973_v46, %v639_v31  ;;  %v979_v31 = vsel %vm970_vm3, %v1905_v10, %v2135_v13 }
  0xd2   : > { %662 = vrot.lane.b32.xlu1 %v573_v51, %s1779_s24  ;;  %646 = vrot.lane.b32.xlu0 %v553_v52, %s1779_s24 }
  0xd4   : > { %v703_v57 = vpop.permute.xlu1 %702  ;;  %v687_v60 = vpop.permute.xlu0 %686 }
  0xd5   : > { %v1015_v26 = vsel %vm1004_vm5, %v998_v56, %v703_v57  ;;  %v1007_v27 = vsel %vm1004_vm5, %v990_v38, %v687_v60  ;;  %v996_v57 = vsel %vm987_vm4, %v979_v31, %v2139_v15  ;;  %v988_v60 = vsel %vm987_vm4, %v971_v43, %v2141_v16 }
  0xd6   : > { %804 = vrot.lane.b32.xlu1 %v451_v23, %s1782_s29  ;;  %788 = vrot.lane.b32.xlu0 %v431_v24, %s1782_s29  ;;  %v2299_v24 = vld [vmem:[%s1886_s20 + $0xc8] sm:$0xff]  ;;  %v1013_v7 = vsel %vm1004_vm5, %v996_v57, %v2173_v33  ;;  %v576_v43 = vrot.slane %v2278_v55, 2 }
  0xd7   : > { %v1030_v15 = vsel %vm1021_vm6, %v1013_v7, %v2189_v41 }
  0xd8   : > { %v2280_v51 = vpop.permute.xlu1 %844  ;;  %v2282_v52 = vpop.permute.xlu0 %828  ;;  %v1047_v33 = vsel %vm1038_vm7, %v1030_v15, %v2225_v63 }
  0xd9   : > { %v1064_v41 = vsel %vm1055_vm8, %v1047_v33, %v2259_v39 }
  0xda   : > { %850 = vrot.lane.b32.xlu1 %v2278_v55, %s1783_s4  ;;  %834 = vrot.lane.b32.xlu0 %v1905_v10, %s1783_s4 }
  0xdc   : > { %v891_v11 = vpop.permute.xlu1 %890  ;;  %v875_v23 = vpop.permute.xlu0 %874 }
  0xdd   : > { %v1081_v46 = vsel %vm1072_vm9, %v1064_v41, %v891_v11 }
  0xde   : > { %664 = vrot.lane.b32.xlu1 %v327_v18, %s1779_s24  ;;  %648 = vrot.lane.b32.xlu0 %v307_v19, %s1779_s24  ;;  %v536_v18 = vrot.slane %v2278_v55, 1  ;;  %v2315_v19 = vrot.slane %v2299_v24, 1 }
  0xe0   : > { %v2294_v44 = vpop.permute.xlu1 %704  ;;  %v2296_v32 = vpop.permute.xlu0 %688  ;;  %v538_v2 = vsel %vm246_vm0, %v536_v18, %v2315_v19 }
  0xe2   : > { %710 = vrot.lane.b32.xlu1 %v2278_v55, %s1780_s27  ;;  %694 = vrot.lane.b32.xlu0 %v1905_v10, %s1780_s27  ;;  %v1005_v10 = vsel %vm1004_vm5, %v988_v60, %v2175_v34  ;;  %v2399_v60 = vrot.slane %v2299_v24, 2  ;;  %v1480_v55 = vld [vmem:[%s1886_s20 + $0xd0] sm:$0x3] }
  0xe3   : > { %v1022_v16 = vsel %vm1021_vm6, %v1005_v10, %v2191_v42 }
  0xe4   : > { %v751_v49 = vpop.permute.xlu1 %750  ;;  %v735_v50 = vpop.permute.xlu0 %734  ;;  %v1039_v34 = vsel %vm1038_vm7, %v1022_v16, %v2227_v4  ;;  %v2367_v4 = vld [vmem:[%s1886_s20 + $0xd0] sm:$0x3]  ;;  %v578_v15 = vsel %vm287_vm1, %v576_v43, %v2399_v60  ;;  %v415_v16 = vrot.slane %v1480_v55, 1 }
  0xe5   : > { %v2320_v62 = vsel %vm1021_vm6, %v1015_v26, %v751_v49  ;;  %v2323_v61 = vsel %vm1021_vm6, %v1007_v27, %v735_v50  ;;  %v1056_v42 = vsel %vm1055_vm8, %v1039_v34, %v2261_v40  ;;  %v2372_v27 = vld [vmem:[%s1886_s20 + $0x70] sm:$0x3]  ;;  %v539_v39 = vrot.slane %v2367_v4, 1 }
  0xe6   : > { %852 = vrot.lane.b32.xlu1 %v2299_v24, %s1783_s4  ;;  %836 = vrot.lane.b32.xlu0 %v1898_v6, %s1783_s4  ;;  %v1073_v63 = vsel %vm1072_vm9, %v1056_v42, %v875_v23  ;;  %v519_v23 = vrot.slane %v2372_v27, 1  ;;  %v982_v49 = vsel %vm970_vm3, %v1947_v28, %v2235_v21  ;;  %v974_v50 = vsel %vm970_vm3, %v1950_v29, %v2237_v22 }
  0xe7   : > { %v999_v31 = vsel %vm987_vm4, %v982_v49, %v2265_v47  ;;  %v991_v57 = vsel %vm987_vm4, %v974_v50, %v2267_v48  ;;  %v540_v28 = vsel %vm246_vm0, %v2315_v19, %v539_v39  ;;  %v1502_v49 = vld [vmem:[%s1886_s20 + $0xd8] sm:$0xff] }
  0xe8   : > { %v2345_v13 = vpop.permute.xlu1 %892  ;;  %v2347_v45 = vpop.permute.xlu0 %876  ;;  %v1016_v29 = vsel %vm1004_vm5, %v999_v31, %v2294_v44  ;;  %v1008_v21 = vsel %vm1004_vm5, %v991_v57, %v2296_v32  ;;  %v520_v48 = vsel %vm246_vm0, %v1902_v8, %v519_v23  ;;  %v972_v44 = vsel %vm970_vm3, %v1889_v0, %v2121_v5  ;;  %v1490_v31 = vld [vmem:[%s1886_s20 + $0x78] sm:$0xff]  ;;  %v1503_v57 = vld [vmem:[%s1886_s20 + $0xe0] sm:$0xff] }
  0xe9   : > { %v980_v32 = vsel %vm970_vm3, %v1898_v6, %v2133_v12  ;;  %v989_v10 = vsel %vm987_vm4, %v972_v44, %v2163_v30 }
  0xea   : > { %898 = vrot.lane.b32.xlu1 %v538_v2, %s1784_s5  ;;  %882 = vrot.lane.b32.xlu0 %v1920_v17, %s1784_s5  ;;  %v997_v7 = vsel %vm987_vm4, %v980_v32, %v2161_v25 }
  0xeb   : > { %v1014_v0 = vsel %vm1004_vm5, %v997_v7, %v2179_v35  ;;  %v1492_v7 = vld [vmem:[%s1886_s20 + $0x88] sm:$0x3] }
  0xec   : > { %v939_v56 = vpop.permute.xlu1 %938  ;;  %v923_v38 = vpop.permute.xlu0 %922  ;;  %v1031_v30 = vsel %vm1021_vm6, %v1014_v0, %v2217_v53  ;;  %v416_v53 = vsel %vm246_vm0, %v2315_v19, %v415_v16  ;;  %v579_v19 = vrot.slane %v2367_v4, 2  ;;  %v524_v0 = vrot.slane %v1492_v7, 1 }
  0xed   : > { %v1098_v18 = vsel %vm1089_vm10, %v1081_v46, %v939_v56  ;;  %v1090_v26 = vsel %vm1089_vm10, %v1073_v63, %v923_v38  ;;  %v1048_v34 = vsel %vm1038_vm7, %v1031_v30, %v2249_v9  ;;  %v559_v63 = vrot.slane %v2372_v27, 2 }
  0xee   : > { %712 = vrot.lane.b32.xlu1 %v2299_v24, %s1780_s27  ;;  %1574 = vmatprep.mubr.msk.f32.mxu1 %vm1118_vm11, %v1098_v18  ;;  %v455_v56 = vrot.slane %v1480_v55, 2  ;;  %v581_v30 = vrot.slane %v1502_v49, 2 }
  0xef   : > { %696 = vrot.lane.b32.xlu0 %v1898_v6, %s1780_s27  ;;  %1562 = vmatprep.mubr.msk.f32.mxu0 %vm1118_vm11, %v1090_v26  ;;  %v1006_v6 = vsel %vm1004_vm5, %v989_v10, %v2181_v36  ;;  %v1065_v36 = vsel %vm1055_vm8, %v1048_v34, %v2280_v51  ;;  %v560_v27 = vsel %vm287_vm1, %v1913_v14, %v559_v63  ;;  %s1686_s27 = sshll.u32 %s1786_s21, 4  ;;  %s1687_s27 = int_to_ptr.vmem [resolvable:$false] %s1686_s27 }
  0xf0   : > { %v2381_v40 = vpop.permute.xlu1 %610  ;;  %v2383_v11 = vpop.permute.xlu0 %594  ;;  %v1023_v33 = vsel %vm1021_vm6, %v1006_v6, %v2219_v54  ;;  %v1082_v54 = vsel %vm1072_vm9, %v1065_v36, %v2345_v13 }
  0xf1   : > { %v1040_v35 = vsel %vm1038_vm7, %v1023_v33, %v2251_v37  ;;  %v983_v38 = vsel %vm970_vm3, %v1997_v58, %v2381_v40  ;;  %v975_v4 = vsel %vm970_vm3, %v2000_v59, %v2383_v11  ;;  %v456_v58 = vsel %vm287_vm1, %v2399_v60, %v455_v56 }
  0xf2   : > { %758 = vrot.lane.b32.xlu1 %v538_v2, %s1781_s28  ;;  %v1468_v2 = vld [vmem:[%s1886_s20 + $0x70] sm:$0x3]  ;;  %v1057_v41 = vsel %vm1055_vm8, %v1040_v35, %v2282_v52  ;;  %v582_v33 = vrot.slane %v1503_v57, 2  ;;  %v561_v35 = vrot.slane %v1490_v31, 2 }
  0xf3   : > { %742 = vrot.lane.b32.xlu0 %v1920_v17, %s1781_s28  ;;  %v395_v25 = vrot.slane %v1468_v2, 1  ;;  %v1074_v9 = vsel %vm1072_vm9, %v1057_v41, %v2347_v45 }
  0xf4   : > { %v753_v22 = vpop.permute.xlu1 %752  ;;  %v737_v47 = vpop.permute.xlu0 %736 }
  0xf5   : > { %v2413_v24 = vsel %vm1021_vm6, %v1016_v29, %v753_v22  ;;  %v2416_v17 = vsel %vm1021_vm6, %v1008_v21, %v737_v47  ;;  %v396_v51 = vsel %vm246_vm0, %v1902_v8, %v395_v25  ;;  %v580_v8 = vsel %vm287_vm1, %v2399_v60, %v579_v19  ;;  %v1491_v60 = vld [vmem:[%s1886_s20 + $0x80] sm:$0xff] }
  0xf6   : > { %900 = vrot.lane.b32.xlu1 %v540_v28, %s1784_s5  ;;  %v541_v28 = vrot.slane %v1502_v49, 1  ;;  %v521_v22 = vrot.slane %v1490_v31, 1  ;;  %v522_v55 = vrot.slane %v1491_v60, 1  ;;  %v562_v36 = vrot.slane %v1491_v60, 2 }
  0xf7   : > { %884 = vrot.lane.b32.xlu0 %v520_v48, %s1784_s5 }
  0xf8   : > { %v2437_v5 = vpop.permute.xlu1 %798  ;;  %v2439_v12 = vpop.permute.xlu0 %782 }
  0xfa   : > { %946 = vrot.lane.b32.xlu1 %v578_v15, %s1785_s8 }
  0xfb   : > { %930 = vrot.lane.b32.xlu0 %v1929_v20, %s1785_s8 }
  0xfc   : > { %v941_v37 = vpop.permute.xlu1 %940  ;;  %v925_v42 = vpop.permute.xlu0 %924 }
  0xfd   : > { %v1099_v46 = vsel %vm1089_vm10, %v1082_v54, %v941_v37  ;;  %v1091_v52 = vsel %vm1089_vm10, %v1074_v9, %v925_v42  ;;  %v525_v54 = vsel %vm246_vm0, %v522_v55, %v524_v0  ;;  %v583_v9 = vsel %vm287_vm1, %v581_v30, %v582_v33 }
  0xfe   : > { %760 = vrot.lane.b32.xlu1 %v416_v53, %s1781_s28  ;;  %1575 = vmatmul.mubr.msk.f32.vlgmr.msra.gmra.mrb[0].mxu1 %vm1118_vm11, %v1099_v46  ;;  %v563_v46 = vsel %vm287_vm1, %v561_v35, %v562_v36 }
  0xff   : > { %744 = vrot.lane.b32.xlu0 %v396_v51, %s1781_s28  ;;  %1563 = vmatmul.mubr.msk.f32.vlgmr.msra.gmra.mrb[0].mxu0 %vm1118_vm11, %v1091_v52  ;;  %v564_v52 = vrot.slane %v1492_v7, 2 }
 0x100   : > { %v613_v13 = vpop.permute.xlu1 %612  ;;  %v597_v45 = vpop.permute.xlu0 %596 }
 0x101   : > { %v984_v29 = vsel %vm970_vm3, %v2011_v1, %v613_v13  ;;  %v976_v21 = vsel %vm970_vm3, %v2014_v3, %v597_v45  ;;  %v523_v3 = vsel %vm246_vm0, %v521_v22, %v522_v55  ;;  %v565_v63 = vsel %vm287_vm1, %v562_v36, %v564_v52 }
 0x102   : > { %806 = vrot.lane.b32.xlu1 %v578_v15, %s1782_s29 }
 0x103   : > { %790 = vrot.lane.b32.xlu0 %v1929_v20, %s1782_s29  ;;  %v435_v20 = vrot.slane %v1468_v2, 2  ;;  %v1504_v2 = vld [vmem:[%s1886_s20 + $0xe8] sm:$0x3]  ;;  %s185_s20 = sand.u32 1, %s1752_s13  }
 0x104   : > { %v659_v18 = vpop.permute.xlu1 %658  ;;  %v643_v26 = vpop.permute.xlu0 %642  ;;  %v544_v1 = vrot.slane %v1504_v2, 1  ;;  %v584_v37 = vrot.slane %v1504_v2, 2  ;;  %s1455_s28 = sshll.u32 %s185_s20, 7  ;;  %s2699_s9 = scalar_lea.sflag [#allocation3], %s185_s20 }
 0x105   : > { %v1000_v39 = vsel %vm987_vm4, %v983_v38, %v659_v18  ;;  %v992_v23 = vsel %vm987_vm4, %v975_v4, %v643_v26  ;;  %v436_v11 = vsel %vm287_vm1, %v1913_v14, %v435_v20  ;;  %v542_v14 = vrot.slane %v1503_v57, 1 }
 0x106   : > { %948 = vrot.lane.b32.xlu1 %v580_v8, %s1785_s8  ;;  %v585_v19 = vsel %vm287_vm1, %v582_v33, %v584_v37 }
 0x107   : > { %932 = vrot.lane.b32.xlu0 %v560_v27, %s1785_s8  ;;  %v543_v10 = vsel %vm246_vm0, %v541_v28, %v542_v14  ;;  %v545_v34 = vsel %vm246_vm0, %v542_v14, %v544_v1 }
 0x108   : > { %v2491_v59 = vpop.permute.xlu1 %800  ;;  %v2493_v40 = vpop.permute.xlu0 %784 }
 0x109   : > { %v1050_v22 = vsel %vm1038_vm7, %v2413_v24, %v2491_v59  ;;  %v2766_v59 = vld [vmem:[#allocation5_spill] sm:$0xff] }
 0x10a   : > { %808 = vrot.lane.b32.xlu1 %v456_v58, %s1782_s29 }
 0x10b   : > { %792 = vrot.lane.b32.xlu0 %v436_v11, %s1782_s29  ;;  %s2657_s29 = scalar_lea.vmem [#allocation2], %s1455_s28  ;;  %s1688_s28 = scalar_lea.vmem %s1687_s27, 4096 }
 0x10c   : > { %v2500_v50 = vpop.permute.xlu1 %846  ;;  %v2502_v43 = vpop.permute.xlu0 %830 }
 0x10e   : > { %854 = vrot.lane.b32.xlu1 %v1502_v49, %s1783_s4 }
 0x10f   : > { %838 = vrot.lane.b32.xlu0 %v1490_v31, %s1783_s4 }
 0x110   : > { %v661_v47 = vpop.permute.xlu1 %660  ;;  %v645_v48 = vpop.permute.xlu0 %644 }
 0x111   : > { %v1001_v44 = vsel %vm987_vm4, %v984_v29, %v661_v47  ;;  %v993_v32 = vsel %vm987_vm4, %v976_v21, %v645_v48  ;;  %v1042_v47 = vsel %vm1038_vm7, %v2416_v17, %v2493_v40 }
 0x112   : > { %856 = vrot.lane.b32.xlu1 %v1503_v57, %s1783_s4 }
 0x113   : > { %840 = vrot.lane.b32.xlu0 %v1491_v60, %s1783_s4  ;;  %s1530_s4 = sshll.u32 %s1760_s15, 4  ;;  %s1365_s15 = sshll.u32 %s2657_s29, 4  ;;  %s2692_s15 = int_to_ptr.vmem [resolvable:$true] %s1365_s15 }
 0x114   : > { %v707_v15 = vpop.permute.xlu1 %706  ;;  %v691_v16 = vpop.permute.xlu0 %690  ;;  %s1682_s10 = scalar_lea.vmem %s2692_s15, 2048  ;;  %p1689_p4 = scmp.lt.s32.totalorder %s2692_s15, %s1687_s27 }
 0x115   : > { %v1017_v6 = vsel %vm1004_vm5, %v1000_v39, %v707_v15  ;;  %v1009_v25 = vsel %vm1004_vm5, %v992_v23, %v691_v16  ;;  %v1049_v39 = vsel %vm1038_vm7, %v2320_v62, %v2437_v5  ;;  %v1041_v23 = vsel %vm1038_vm7, %v2323_v61, %v2439_v12  ;;  %v2767_v15 = vld [vmem:[#allocation6_spill] sm:$0xff]  ;;  %p1683_p0 = scmp.ne.s32.totalorder %s2692_s15, %s1682_s10  ;;  %p1690_p5 = scmp.lt.s32.totalorder %s1688_s28, %s1682_s10 }
 0x116   : > { %902 = vrot.lane.b32.xlu1 %v543_v10, %s1784_s5  ;;  %v1066_v58 = vsel %vm1055_vm8, %v1049_v39, %v2500_v50  ;;  %v1058_v11 = vsel %vm1055_vm8, %v1041_v23, %v2502_v43 }
 0x117   : > { %886 = vrot.lane.b32.xlu0 %v523_v3, %s1784_s5  ;;  %p1684_p1 = pnand %p1683_p0, %p1859_p3  ;;  %p1691_p6 = por %p1690_p5, %p1689_p4 }
 0x118   : > { %v849_v41 = vpop.permute.xlu1 %848  ;;  %v833_v53 = vpop.permute.xlu0 %832 }
 0x119   : > { %v1067_v48 = vsel %vm1055_vm8, %v1050_v22, %v849_v41  ;;  %v1059_v55 = vsel %vm1055_vm8, %v1042_v47, %v833_v53  ;;  %p1685_p2 = pneg %p1684_p1 }
 0x11a   : > { %904 = vrot.lane.b32.xlu1 %v545_v34, %s1784_s5 }
 0x11b   : > { %888 = vrot.lane.b32.xlu0 %v525_v54, %s1784_s5  ;;  %s1526_s5 = sshll.u32 %s1764_s16, 5  ;;  %p1692_p7 = pnand %p1691_p6, %p1685_p2 }
 0x11c   : > { %v895_v42 = vpop.permute.xlu1 %894  ;;  %v879_v51 = vpop.permute.xlu0 %878  ;;  %s1362_s11 = sadd.s32 %s1530_s4, %s1526_s5 }
 0x11d   : > { %v1083_v49 = vsel %vm1072_vm9, %v1066_v58, %v895_v42  ;;  %v1075_v31 = vsel %vm1072_vm9, %v1058_v11, %v879_v51  ;;  %s1527_s6 = sshll.u32 %s1362_s11, 7 }
 0x11e   : > { %950 = vrot.lane.b32.xlu1 %v583_v9, %s1785_s8 }
 0x11f   : > { %934 = vrot.lane.b32.xlu0 %v563_v46, %s1785_s8 }
 0x120   : > { %v709_v13 = vpop.permute.xlu1 %708  ;;  %v693_v45 = vpop.permute.xlu0 %692 }
 0x121   : > { %v1018_v8 = vsel %vm1004_vm5, %v1001_v44, %v709_v13  ;;  %v1010_v56 = vsel %vm1004_vm5, %v993_v32, %v693_v45 }
 0x122   : > { %952 = vrot.lane.b32.xlu1 %v585_v19, %s1785_s8 }
 0x123   : > { %936 = vrot.lane.b32.xlu0 %v565_v63, %s1785_s8  ;;  %s2689_s8 = scalar_lea.hbm %s2755_s3, %s1527_s6 }
 0x124   : > { %v755_v38 = vpop.permute.xlu1 %754  ;;  %v739_v4 = vpop.permute.xlu0 %738 }
 0x125   : > { %v2540_v18 = vsel %vm1021_vm6, %v1017_v6, %v755_v38  ;;  %v2543_v26 = vsel %vm1021_vm6, %v1009_v25, %v739_v4 }
 0x128   : > { %v897_v27 = vpop.permute.xlu1 %896  ;;  %v881_v20 = vpop.permute.xlu0 %880 }
 0x129   : > { %v1084_v2 = vsel %vm1072_vm9, %v1067_v48, %v897_v27  ;;  %v1076_v44 = vsel %vm1072_vm9, %v1059_v55, %v881_v20 }
 0x12c   : > { %v943_v57 = vpop.permute.xlu1 %942  ;;  %v927_v60 = vpop.permute.xlu0 %926 }
 0x12d   : > { %v1100_v28 = vsel %vm1089_vm10, %v1083_v49, %v943_v57  ;;  %v1092_v62 = vsel %vm1089_vm10, %v1075_v31, %v927_v60 }
 0x12e   : > { %1565 = vmatprep.mubr.msk.f32.mxu0 %vm1118_vm11, %v1092_v62  ;;  %1577 = vmatprep.mubr.msk.f32.mxu1 %vm1118_vm11, %v1100_v28 }
 0x130   : > { %v615_v61 = vpop.permute.xlu1 %614  ;;  %v599_v5 = vpop.permute.xlu0 %598 }
 0x131   : > { %v985_v40 = vsel %vm970_vm3, %v2766_v59, %v615_v61  ;;  %v977_v16 = vsel %vm970_vm3, %v2767_v15, %v599_v5 }
 0x134   : > { %v757_v12 = vpop.permute.xlu1 %756  ;;  %v741_v50 = vpop.permute.xlu0 %740 }
 0x135   : > { %v1035_v43 = vsel %vm1021_vm6, %v1018_v8, %v757_v12  ;;  %v1027_v14 = vsel %vm1021_vm6, %v1010_v56, %v741_v50 }
 0x138   : > { %v803_v29 = vpop.permute.xlu1 %802  ;;  %v787_v21 = vpop.permute.xlu0 %786 }
 0x139   : > { %v1051_v8 = vsel %vm1038_vm7, %v2540_v18, %v803_v29  ;;  %v1043_v56 = vsel %vm1038_vm7, %v2543_v26, %v787_v21 }
 0x13c   : > { %v945_v32 = vpop.permute.xlu1 %944  ;;  %v929_v7 = vpop.permute.xlu0 %928 }
 0x13d   : > { %v1101_v10 = vsel %vm1089_vm10, %v1084_v2, %v945_v32  ;;  %v1093_v1 = vsel %vm1089_vm10, %v1076_v44, %v929_v7 }
 0x13e   : > { %1566 = vmatmul.mubr.msk.f32.gmra.mrb[2].mxu0 %vm1118_vm11, %v1093_v1  ;;  %1578 = vmatmul.mubr.msk.f32.gmra.mrb[2].mxu1 %vm1118_vm11, %v1101_v10 }
 0x140   : > { %v2577_v24 = vpop.permute.xlu1 %616  ;;  %v2579_v17 = vpop.permute.xlu0 %600 }
 0x144   : > { %v663_v3 = vpop.permute.xlu1 %662  ;;  %v647_v0 = vpop.permute.xlu0 %646 }
 0x145   : > { %v1002_v6 = vsel %vm987_vm4, %v985_v40, %v663_v3  ;;  %v994_v25 = vsel %vm987_vm4, %v977_v16, %v647_v0  ;;  %v2768_v40 = vld [vmem:[#allocation7_spill] sm:$0xff]  ;;  %v2769_v0 = vld [vmem:[#allocation8_spill] sm:$0xff] }
 0x146   : > { %v986_v15 = vsel %vm970_vm3, %v2768_v40, %v2577_v24 }
 0x148   : > { %v805_v30 = vpop.permute.xlu1 %804  ;;  %v789_v33 = vpop.permute.xlu0 %788 }
 0x149   : > { %v1052_v57 = vsel %vm1038_vm7, %v1035_v43, %v805_v30  ;;  %v1044_v60 = vsel %vm1038_vm7, %v1027_v14, %v789_v33  ;;  %v978_v30 = vsel %vm970_vm3, %v2769_v0, %v2579_v17 }
 0x14c   : > { %v851_v34 = vpop.permute.xlu1 %850  ;;  %v835_v35 = vpop.permute.xlu0 %834 }
 0x14d   : > { %v1068_v38 = vsel %vm1055_vm8, %v1051_v8, %v851_v34  ;;  %v1060_v4 = vsel %vm1055_vm8, %v1043_v56, %v835_v35 }
 0x150   : > { %v665_v36 = vpop.permute.xlu1 %664  ;;  %v649_v41 = vpop.permute.xlu0 %648 }
 0x151   : > { %v995_v34 = vsel %vm987_vm4, %v978_v30, %v649_v41 }
 0x154   : > { %v711_v53 = vpop.permute.xlu1 %710  ;;  %v695_v54 = vpop.permute.xlu0 %694 }
 0x155   : > { %v1019_v32 = vsel %vm1004_vm5, %v1002_v6, %v711_v53  ;;  %v1011_v10 = vsel %vm1004_vm5, %v994_v25, %v695_v54  ;;  %v1003_v6 = vsel %vm987_vm4, %v986_v15, %v665_v36 }
 0x158   : > { %v853_v9 = vpop.permute.xlu1 %852  ;;  %v837_v37 = vpop.permute.xlu0 %836 }
 0x159   : > { %v1069_v28 = vsel %vm1055_vm8, %v1052_v57, %v853_v9  ;;  %v1061_v62 = vsel %vm1055_vm8, %v1044_v60, %v837_v37 }
 0x15c   : > { %v899_v42 = vpop.permute.xlu1 %898  ;;  %v883_v51 = vpop.permute.xlu0 %882 }
 0x15d   : > { %v1085_v27 = vsel %vm1072_vm9, %v1068_v38, %v899_v42  ;;  %v1077_v39 = vsel %vm1072_vm9, %v1060_v4, %v883_v51 }
 0x160   : > { %v713_v46 = vpop.permute.xlu1 %712 }
 0x161   : > { %v697_v52 = vpop.permute.xlu0 %696  ;;  %v1020_v35 = vsel %vm1004_vm5, %v1003_v6, %v713_v46 }
 0x162   : > { %v1012_v9 = vsel %vm1004_vm5, %v995_v34, %v697_v52 }
 0x164   : > { %v759_v19 = vpop.permute.xlu1 %758 }
 0x165   : > { %v743_v13 = vpop.permute.xlu0 %742  ;;  %v1036_v1 = vsel %vm1021_vm6, %v1019_v32, %v759_v19 }
 0x166   : > { %v1028_v16 = vsel %vm1021_vm6, %v1011_v10, %v743_v13 }
 0x168   : > { %v901_v45 = vpop.permute.xlu1 %900 }
 0x169   : > { %v885_v63 = vpop.permute.xlu0 %884  ;;  %v1086_v61 = vsel %vm1072_vm9, %v1069_v28, %v901_v45 }
 0x16a   : > { %v1078_v12 = vsel %vm1072_vm9, %v1061_v62, %v885_v63 }
 0x16c   : > { %v947_v20 = vpop.permute.xlu1 %946 }
 0x16d   : > { %v1102_v23 = vsel %vm1089_vm10, %v1085_v27, %v947_v20  ;;  %v931_v58 = vpop.permute.xlu0 %930  ;;  %v2649_v27 = vld [vmem:[%s2754_s2] ss:$0 sm:$0xff] }
 0x16e   : > { %v1094_v11 = vsel %vm1089_vm10, %v1077_v39, %v931_v58  ;;  %1580 = vmatprep.mubr.msk.f32.mxu1 %vm1118_vm11, %v1102_v23 }
 0x16f   : > { %1568 = vmatprep.mubr.msk.f32.mxu0 %vm1118_vm11, %v1094_v11 }
 0x170   : > { %v761_v18 = vpop.permute.xlu1 %760 }
 0x171   : > { %v745_v26 = vpop.permute.xlu0 %744  ;;  %v1037_v37 = vsel %vm1021_vm6, %v1020_v35, %v761_v18 }
 0x172   : > { %v1029_v51 = vsel %vm1021_vm6, %v1012_v9, %v745_v26 }
 0x174   : > { %v807_v49 = vpop.permute.xlu1 %806 }
 0x175   : > { %v791_v31 = vpop.permute.xlu0 %790  ;;  %v1053_v3 = vsel %vm1038_vm7, %v1036_v1, %v807_v49 }
 0x176   : > { %v1045_v33 = vsel %vm1038_vm7, %v1028_v16, %v791_v31 }
 0x178   : > { %v949_v5 = vpop.permute.xlu1 %948 }
 0x179   : > { %v1103_v50 = vsel %vm1089_vm10, %v1086_v61, %v949_v5  ;;  %v933_v29 = vpop.permute.xlu0 %932 }
 0x17a   : > { %v1095_v21 = vsel %vm1089_vm10, %v1078_v12, %v933_v29  ;;  %1581 = vmatmul.mubr.msk.f32.gmra.mrb[4].mxu1 %vm1118_vm11, %v1103_v50 }
 0x17b   : > { %1569 = vmatmul.mubr.msk.f32.gmra.mrb[4].mxu0 %vm1118_vm11, %v1095_v21 }
 0x17c   : > { %v809_v43 = vpop.permute.xlu1 %808 }
 0x17d   : > { %v793_v14 = vpop.permute.xlu0 %792  ;;  %v1054_v41 = vsel %vm1038_vm7, %v1037_v37, %v809_v43 }
 0x17e   : > { %v1046_v19 = vsel %vm1038_vm7, %v1029_v51, %v793_v14 }
 0x180   : > { %v855_v22 = vpop.permute.xlu1 %854 }
 0x181   : > { %v839_v47 = vpop.permute.xlu0 %838  ;;  %v1070_v25 = vsel %vm1055_vm8, %v1053_v3, %v855_v22 }
 0x182   : > { %v1062_v24 = vsel %vm1055_vm8, %v1045_v33, %v839_v47 }
 0x184   : > { %v857_v48 = vpop.permute.xlu1 %856 }
 0x185   : > { %v841_v55 = vpop.permute.xlu0 %840  ;;  %v1071_v52 = vsel %vm1055_vm8, %v1054_v41, %v857_v48 }
 0x186   : > { %v1063_v13 = vsel %vm1055_vm8, %v1046_v19, %v841_v55 }
 0x188   : > { %v903_v2 = vpop.permute.xlu1 %902 }
 0x189   : > { %v887_v44 = vpop.permute.xlu0 %886  ;;  %v1087_v53 = vsel %vm1072_vm9, %v1070_v25, %v903_v2 }
 0x18a   : > { %v1079_v17 = vsel %vm1072_vm9, %v1062_v24, %v887_v44 }
 0x18c   : > { %v905_v7 = vpop.permute.xlu1 %904 }
 0x18d   : > { %v889_v59 = vpop.permute.xlu0 %888  ;;  %v1088_v45 = vsel %vm1072_vm9, %v1071_v52, %v905_v7 }
 0x18e   : > { %v1080_v8 = vsel %vm1072_vm9, %v1063_v13, %v889_v59 }
 0x190   : > { %v951_v54 = vpop.permute.xlu1 %950 }
 0x191   : > { %v1104_v36 = vsel %vm1089_vm10, %v1087_v53, %v951_v54  ;;  %v935_v42 = vpop.permute.xlu0 %934 }
 0x192   : > { %v1096_v46 = vsel %vm1089_vm10, %v1079_v17, %v935_v42  ;;  %1583 = vmatprep.mubr.msk.f32.mxu1 %vm1118_vm11, %v1104_v36 }
 0x193   : > { %1571 = vmatprep.mubr.msk.f32.mxu0 %vm1118_vm11, %v1096_v46 }
 0x194   : > { %v953_v63 = vpop.permute.xlu1 %952 }
 0x195   : > { %v1105_v56 = vsel %vm1089_vm10, %v1088_v45, %v953_v63  ;;  %v937_v38 = vpop.permute.xlu0 %936 }
 0x196   : > { %v1097_v4 = vsel %vm1089_vm10, %v1080_v8, %v937_v38  ;;  %1584 = vmatmul.mubr.msk.f32.gmra.mrb[6].mxu1 %vm1118_vm11, %v1105_v56 }
 0x197   : > { %1572 = vmatmul.mubr.msk.f32.gmra.mrb[6].mxu0 %vm1118_vm11, %v1097_v4 }
 0x1d1   : > { %v1576_v20 = vpop.f32.mrb[0].mxu1 }
 0x1d2   : > { %v1564_v39 = vpop.f32.mrb[0].mxu0  ;;  %v1283_v23 = vadd.f32 %v1576_v20, %v2649_v27  ;;  %v1277_v58 = vpop.f32.mrb[1].mxu1 }
 0x1d3   : > { %v1243_v11 = vadd.f32 %v1564_v39, %v2649_v27  ;;  %v1237_v18 = vpop.f32.mrb[1].mxu0  ;;  %v1278_v26 = vadd.f32 %v2649_v27, %v1277_v58 }
 0x1d4   : > { %v1325_v49 = vmax.f32 %v1283_v23, 0.0  ;;  %v1238_v31 = vadd.f32 %v2649_v27, %v1237_v18 }
 0x1d5   : > { %v1317_v57 = vmax.f32 %v1243_v11, 0.0  ;;  %v1324_v60 = vmax.f32 %v1278_v26, 0.0 }
 0x1d6   : > { %1341 = vst [vmem:[%s2657_s29 + $0x48] sm:$0xff] %v1325_v49  ;;  %v1316_v28 = vmax.f32 %v1238_v31, 0.0 }
 0x1d7   : > { %1333 = vst [vmem:[%s2657_s29 + $0x8] sm:$0xff] %v1317_v57  ;;  %1340 = vst [vmem:[%s2657_s29 + $0x40] sm:$0xff] %v1324_v60 }
 0x1d8   : > { %1332 = vst [vmem:[%s2657_s29] sm:$0xff] %v1316_v28 }
 0x211   : > { %v1567_v62 = vpop.f32.mrb[2].mxu0  ;;  %v1579_v61 = vpop.f32.mrb[2].mxu1 }
 0x212   : > { %v1253_v5 = vadd.f32 %v1567_v62, %v2649_v27  ;;  %v1293_v12 = vadd.f32 %v1579_v61, %v2649_v27  ;;  %v1247_v50 = vpop.f32.mrb[3].mxu0  ;;  %v1287_v29 = vpop.f32.mrb[3].mxu1 }
 0x213   : > { %v1248_v21 = vadd.f32 %v2649_v27, %v1247_v50  ;;  %v1288_v43 = vadd.f32 %v2649_v27, %v1287_v29 }
 0x214   : > { %v1319_v14 = vmax.f32 %v1253_v5, 0.0  ;;  %v1327_v22 = vmax.f32 %v1293_v12, 0.0 }
 0x215   : > { %v1318_v47 = vmax.f32 %v1248_v21, 0.0  ;;  %v1326_v48 = vmax.f32 %v1288_v43, 0.0 }
 0x216   : > { %1335 = vst [vmem:[%s2657_s29 + $0x18] sm:$0xff] %v1319_v14  ;;  %1343 = vst [vmem:[%s2657_s29 + $0x58] sm:$0xff] %v1327_v22 }
 0x217   : > { %1334 = vst [vmem:[%s2657_s29 + $0x10] sm:$0xff] %v1318_v47  ;;  %1342 = vst [vmem:[%s2657_s29 + $0x50] sm:$0xff] %v1326_v48 }
 0x24d   : > { %v1582_v55 = vpop.f32.mrb[4].mxu1 }
 0x24e   : > { %v1570_v2 = vpop.f32.mrb[4].mxu0  ;;  %v1303_v44 = vadd.f32 %v1582_v55, %v2649_v27  ;;  %v1297_v32 = vpop.f32.mrb[5].mxu1 }
 0x24f   : > { %v1263_v7 = vadd.f32 %v1570_v2, %v2649_v27  ;;  %v1257_v10 = vpop.f32.mrb[5].mxu0  ;;  %v1298_v1 = vadd.f32 %v2649_v27, %v1297_v32 }
 0x250   : > { %v1329_v59 = vmax.f32 %v1303_v44, 0.0  ;;  %v1258_v40 = vadd.f32 %v2649_v27, %v1257_v10 }
 0x251   : > { %v1321_v15 = vmax.f32 %v1263_v7, 0.0  ;;  %v1328_v16 = vmax.f32 %v1298_v1, 0.0 }
 0x252   : > { %1345 = vst [vmem:[%s2657_s29 + $0x68] sm:$0xff] %v1329_v59  ;;  %v1320_v3 = vmax.f32 %v1258_v40, 0.0 }
 0x253   : > { %1337 = vst [vmem:[%s2657_s29 + $0x28] sm:$0xff] %v1321_v15  ;;  %1344 = vst [vmem:[%s2657_s29 + $0x60] sm:$0xff] %v1328_v16 }
 0x254   : > { %1336 = vst [vmem:[%s2657_s29 + $0x20] sm:$0xff] %v1320_v3 }
 0x269   : > { %v1585_v0 = vpop.f32.mrb[6].mxu1 }
 0x26a   : > { %v1573_v30 = vpop.f32.mrb[6].mxu0  ;;  %v1313_v6 = vadd.f32 %v1585_v0, %v2649_v27  ;;  %v1307_v33 = vpop.f32.mrb[7].mxu1 }
 0x26b   : > { %v1273_v25 = vadd.f32 %v1573_v30, %v2649_v27  ;;  %v1267_v34 = vpop.f32.mrb[7].mxu0  ;;  %v1308_v35 = vadd.f32 %v2649_v27, %v1307_v33 }
 0x26c   : > { %v1331_v24 = vmax.f32 %v1313_v6, 0.0  ;;  %v1268_v53 = vadd.f32 %v2649_v27, %v1267_v34 }
 0x26d   : > { %v1323_v54 = vmax.f32 %v1273_v25, 0.0  ;;  %v1330_v9 = vmax.f32 %v1308_v35, 0.0 }
 0x26e   : > { %1347 = vst [vmem:[%s2657_s29 + $0x78] sm:$0xff] %v1331_v24  ;;  %v1322_v37 = vmax.f32 %v1268_v53, 0.0 }
 0x26f   : > { %1339 = vst [vmem:[%s2657_s29 + $0x38] sm:$0xff] %v1323_v54  ;;  %1346 = vst [vmem:[%s2657_s29 + $0x70] sm:$0xff] %v1330_v9 }
 0x270   : > { %1338 = vst [vmem:[%s2657_s29 + $0x30] sm:$0xff] %v1322_v37 }
 0x271   : > { %1695 = shalt.err (!%p1692_p7)
}
 0x272   : > { %s1696_s20 = scalar_lea.hbm %s2689_s8, 2048  ;;  %s1700_s5 = scalar_lea.hbm %s2755_s3, 8192 }
 0x273   : > { %p1697_p9 = scmp.ne.s32.totalorder %s2689_s8, %s1696_s20  ;;  %p1701_p12 = scmp.lt.u32.totalorder %s2689_s8, %s2755_s3 }
 0x274   : > { %p1702_p13 = scmp.lt.u32.totalorder %s1700_s5, %s1696_s20  ;;  %p1704_p1 = scmp.lt.u32.totalorder %s1696_s20, %s2689_s8 }
 0x275   : > { %p1698_p10 = pnand %p1697_p9, %p1859_p3 }
 0x276   : > { %p1703_p0 = por %p1702_p13, %p1701_p12 }
 0x277   : > { %p1699_p11 = pneg %p1698_p10 }
 0x278   : > { %p1705_p2 = por %p1704_p1, %p1703_p0 }
 0x27a   : > { %p1706_p4 = pnand %p1705_p2, %p1699_p11 }
 0x27c   : > { %1709 = shalt.err (!%p1706_p4)
}
 0x27d   : > { %s1787_s16 = smov 128  }
 0x27e   : > { %1602 = dma.vmem_to_hbm [thread:$0]  (%p1859_p3), %s2692_s15, 2048, %s2689_s8, %s2699_s9, %s1787_s16, %s1787_s16, %s1779_s24  }
 0x27f PF: > { %p1608_p5 = scmp.ge.s32.totalorder %s1776_s19, 2  ;;  %s1380_s7 = sand.u32 1, %s1748_s12  }
 0x280   : > { %s1381_s10 = scalar_lea.sflag [#allocation3], %s1380_s7 }
 0x281   : > { %p1605_p6 = pnand %p1608_p5, %p1868_p8 }
 0x283   : > { %1743 = dma.done.wait (!%p1605_p6), %s1381_s10, 2048  }
 0x284   : > { %1745 = vsyncadd (!%p1605_p6), %s1381_s10, 4294965248  ;;  %s16_s19 = sadd.s32 1, %s1776_s19   ;;  %s2770_s12 = smov %s1752_s13 }
 0x285   : > { %p13_p7 = scmp.ge.s32.totalorder %s16_s19, 6   ;;  %s2771_s13 = smov %s1756_s14 }
 0x286   : > { %s2772_s14 = smov %s1877_s30  ;;  %s2773_s15 = smov %s1768_s17 }
 0x287   : > { %s2774_s16 = smov %s1772_s18  ;;  %s2775_s17 = smov %s2778_s22 }
 0x288   : > { %s2776_s18 = smov %s2782_s23  ;;  %15 = sbr.rel (!%p13_p7) target bundleno = 5 (0x5), region = 69 }
 0x28f   :  { %1386 = vsyncpa [#allocation3], 1 }
 0x290   :  { %1388 = vsyncpa [#allocation3 + $0x1], 1 }

</bundles_post_ra>
